<compile_context>
chip_gen: v5e
topology: v5e:2x2
jax: 0.10.0
libtpu: 0.0.40
codegen_flags: <defaults>
</compile_context>

<pallas_src>
import functools

import jax
import jax.numpy as jnp
from jax.experimental import pallas as pl
from jax.experimental.pallas import tpu as pltpu


def _round_up(n, m):
    return ((n + m - 1) // m) * m


def _cdiv(a, b):
    return -(-a // b)


def _sigmoid(x):
    # sigmoid(x) == 0.5*tanh(0.5*x) + 0.5 : single EUP op (tanh) + cheap VPU mul/add,
    # instead of exp + divide.
    return 0.5 * jnp.tanh(0.5 * x) + 0.5


def autoencoder_kernel(x_ref, wg_ref, bg_ref, wh_ref, bh_ref, o_ref, *, n_chunks):
    # Whole forward fused in VMEM per batch tile (no HBM round-trip for the hidden
    # activation). The tile is split into independent sub-chunks so the decoder matmul
    # (MXU) of chunk c can overlap the sigmoid (EUP) of chunk c+1.
    tb = x_ref.shape[0]
    cs = tb // n_chunks
    wg = wg_ref[...]          # (Q, Kp)  bf16, pinned
    bg = bg_ref[...]          # (1, Kp)  f32
    wh = wh_ref[...]          # (Kp, Q)  bf16, pinned
    bh = bh_ref[...]          # (1, Q)   f32
    for c in range(n_chunks):
        rows = slice(c * cs, (c + 1) * cs)
        x = x_ref[rows, :]                                              # bf16 (cs, Q)
        pre_h = jnp.dot(x, wg, preferred_element_type=jnp.float32) + bg  # f32 (cs, Kp)
        h = _sigmoid(pre_h)
        pre_f = jnp.dot(h.astype(wh.dtype), wh,
                        preferred_element_type=jnp.float32) + bh         # f32 (cs, Q)
        o_ref[rows, :] = _sigmoid(pre_f).astype(o_ref.dtype)


def prepare_params(w_g, b_g, w_h, b_h, *, weight_dtype=jnp.bfloat16):
    """One-time conversion from PyTorch nn.Linear layout to kernel layout.

    In : w_g (K, Q), b_g (K,), w_h (Q, K), b_h (Q,)  -- f32.
    Out: wg_t (Q, Kp) weight_dtype, bg (1, Kp) f32, wh_t (Kp, Q) weight_dtype, bh (1, Q) f32,
         with K zero-padded to Kp = round_up(K, 128). Padded W_h^T rows are zero, so the
         padded hidden units (sigmoid(0)=0.5) contribute nothing to the output.
    """
    K, Q = w_g.shape
    Kp = _round_up(K, 128)          # do NOT pad further (e.g. to 256): wasted EUP/flops
    wg_t = jnp.transpose(w_g)       # (Q, K)
    wh_t = jnp.transpose(w_h)       # (K, Q)
    if Kp != K:
        wg_t = jnp.pad(wg_t, ((0, 0), (0, Kp - K)))
        wh_t = jnp.pad(wh_t, ((0, Kp - K), (0, 0)))
        b_g = jnp.pad(b_g, (0, Kp - K))
    return (wg_t.astype(weight_dtype),
            b_g.reshape(1, Kp).astype(jnp.float32),
            wh_t.astype(weight_dtype),
            b_h.reshape(1, Q).astype(jnp.float32))


def autoencoder_forward(x, wg_t, bg, wh_t, bh, *, batch_tile=256, out_dtype=None):
    """x: (B, Q). Params in kernel layout from prepare_params(). Returns (B, Q)."""
    B, Q = x.shape
    Kp = wg_t.shape[1]
    out_dtype = x.dtype if out_dtype is None else out_dtype

    # Stream x as bf16 (one cast in the wrapper, none per tile in the kernel).
    x_in = x if x.dtype == jnp.bfloat16 else x.astype(jnp.bfloat16)

    # Batch tile: multiple of 16 (bf16 sublane packing), >= 128 preferred (fills MXU M dim).
    batch_tile = max(16, _round_up(batch_tile, 16))
    if B <= batch_tile:
        TB, n_tiles = B, 1                       # single full-extent block, no ragged rows
    else:
        TB = batch_tile
        n_tiles = _cdiv(B, TB)
        # Prefer an even grid length (clean 2-way split across v7x's 2 TensorCores) without
        # adding padded tiles; only if the tile stays MXU-M-full (>=128).
        if n_tiles % 2 == 1:
            alt = _round_up(_cdiv(B, n_tiles + 1), 16)
            if alt >= 128 and _cdiv(B, alt) % 2 == 0:
                TB = alt
                n_tiles = _cdiv(B, TB)
    # Ragged last tile (B % TB != 0) needs no host-side pad/slice: Pallas drops
    # out-of-range rows on store and rows are independent, so garbage reads are harmless.

    n_chunks = 2 if (TB % 32 == 0 and TB >= 64) else 1

    w_itemsize = jnp.dtype(wg_t.dtype).itemsize
    x_itemsize = jnp.dtype(x_in.dtype).itemsize
    o_itemsize = jnp.dtype(out_dtype).itemsize
    weight_bytes = 2 * Q * Kp * w_itemsize + (Kp + Q) * 4

    rows = n_tiles * TB
    cost = pl.CostEstimate(
        flops=4 * rows * Q * Kp,                                   # two matmuls
        transcendentals=rows * (Kp + Q),                           # one tanh per element
        bytes_accessed=rows * Q * (x_itemsize + o_itemsize) + weight_bytes,
    )

    # Explicit VMEM budget (portable to v7x's 64 MiB/TC): double-buffered streamed x/out
    # tiles + weights + f32 intermediates, with 2x headroom.
    est = (2 * TB * Q * (x_itemsize + o_itemsize)
           + 2 * weight_bytes
           + 6 * TB * max(Kp, Q) * 4)
    vmem_limit = int(max(8 * 2**20, min(48 * 2**20, 2 * est)))

    return pl.pallas_call(
        functools.partial(autoencoder_kernel, n_chunks=n_chunks),
        out_shape=jax.ShapeDtypeStruct((B, Q), out_dtype),
        grid=(n_tiles,),
        in_specs=[
            pl.BlockSpec((TB, Q), lambda i: (i, 0)),    # x tile (streamed, bf16)
            pl.BlockSpec((Q, Kp), lambda i: (0, 0)),    # W_g^T (pinned, no re-DMA)
            pl.BlockSpec((1, Kp), lambda i: (0, 0)),    # b_g   (pinned)
            pl.BlockSpec((Kp, Q), lambda i: (0, 0)),    # W_h^T (pinned)
            pl.BlockSpec((1, Q), lambda i: (0, 0)),     # b_h   (pinned)
        ],
        out_specs=pl.BlockSpec((TB, Q), lambda i: (i, 0)),
        compiler_params=pltpu.CompilerParams(
            dimension_semantics=("parallel",),          # shard batch tiles across TCs (v7x)
            vmem_limit_bytes=vmem_limit,
        ),
        cost_estimate=cost,
    )(x_in, wg_t, bg, wh_t, bh)


def init_params(key, num_question, k):
    """Deterministic init mimicking nn.Linear (uniform +/- 1/sqrt(fan_in)), PyTorch layout."""
    k1, k2, k3, k4 = jax.random.split(key, 4)
    bound_g = 1.0 / jnp.sqrt(num_question)
    bound_h = 1.0 / jnp.sqrt(k)
    w_g = jax.random.uniform(k1, (k, num_question), jnp.float32, -bound_g, bound_g)
    b_g = jax.random.uniform(k2, (k,), jnp.float32, -bound_g, bound_g)
    w_h = jax.random.uniform(k3, (num_question, k), jnp.float32, -bound_h, bound_h)
    b_h = jax.random.uniform(k4, (num_question,), jnp.float32, -bound_h, bound_h)
    return w_g, b_g, w_h, b_h


if __name__ == "__main__":
    key = jax.random.PRNGKey(0)
    num_question = 256
    k = 100                    # module's default hidden size; padded to Kp=128

    k_p, k_x1, k_x2 = jax.random.split(key, 3)
    w_g, b_g, w_h, b_h = init_params(k_p, num_question, k)   # PyTorch layout, f32
    params = prepare_params(w_g, b_g, w_h, b_h)              # one-time transpose/pad/bf16

    def reference(x):          # pure-JAX f32 reference (same math as the PyTorch forward)
        h = jax.nn.sigmoid(x @ w_g.T + b_g)
        return jax.nn.sigmoid(h @ w_h.T + b_h)

    # Case 1: tile-aligned batch -> TB=256, grid=(2,) (even: clean 2-TC split on v7x).
    x1 = jax.random.normal(k_x1, (512, num_question), jnp.float32)
    out1 = jax.block_until_ready(autoencoder_forward(x1, *params))
    assert out1.shape == x1.shape and out1.dtype == x1.dtype
    err1 = float(jnp.max(jnp.abs(out1 - reference(x1))))
    assert err1 < 2e-2, f"case1 mismatch vs f32 reference: max abs err {err1}"

    # Case 2: ragged batch (not a tile multiple) -> no host pad / output slice needed.
    x2 = jax.random.normal(k_x2, (300, num_question), jnp.float32)
    out2 = jax.block_until_ready(autoencoder_forward(x2, *params))
    assert out2.shape == x2.shape
    err2 = float(jnp.max(jnp.abs(out2 - reference(x2))))
    assert err2 < 2e-2, f"case2 mismatch vs f32 reference: max abs err {err2}"

    print("KERNEL_OK")
</pallas_src>

<mosaic_0001>
module attributes {stable_mosaic.version = 11 : i64} {
  func.func @autoencoder_kernel(%arg0: i32, %arg1: memref<256x256xbf16, #tpu.memory_space<vmem>>, %arg2: memref<256x128xbf16, #tpu.memory_space<vmem>>, %arg3: memref<1x128xf32, #tpu.memory_space<vmem>>, %arg4: memref<128x256xbf16, #tpu.memory_space<vmem>>, %arg5: memref<1x256xf32, #tpu.memory_space<vmem>>, %arg6: memref<256x256xf32, #tpu.memory_space<vmem>>) attributes {dimension_semantics = [#tpu.dimension_semantics<parallel>], iteration_bounds = array<i64: 2>, scalar_prefetch = 0 : i64, scratch_operands = 0 : i64, tpu.core_type = #tpu.core_type<tc>, window_params = [{transform_indices = @transform_0, window_bounds = array<i64: 256, 256>}, {pipeline_mode = #tpu.pipeline_mode<synchronous>, transform_indices = @transform_1, window_bounds = array<i64: 256, 128>}, {pipeline_mode = #tpu.pipeline_mode<synchronous>, transform_indices = @transform_2, window_bounds = array<i64: 1, 128>}, {pipeline_mode = #tpu.pipeline_mode<synchronous>, transform_indices = @transform_3, window_bounds = array<i64: 128, 256>}, {pipeline_mode = #tpu.pipeline_mode<synchronous>, transform_indices = @transform_4, window_bounds = array<i64: 1, 256>}, {transform_indices = @transform_5, window_bounds = array<i64: 256, 256>}]} {
    %c0 = arith.constant 0 : index
    %c0_0 = arith.constant 0 : index
    %0 = vector.load %arg2[%c0, %c0_0] : memref<256x128xbf16, #tpu.memory_space<vmem>>, vector<256x128xbf16>
    %c0_1 = arith.constant 0 : index
    %c0_2 = arith.constant 0 : index
    %1 = vector.load %arg3[%c0_1, %c0_2] : memref<1x128xf32, #tpu.memory_space<vmem>>, vector<1x128xf32>
    %c0_3 = arith.constant 0 : index
    %c0_4 = arith.constant 0 : index
    %2 = vector.load %arg4[%c0_3, %c0_4] : memref<128x256xbf16, #tpu.memory_space<vmem>>, vector<128x256xbf16>
    %c0_5 = arith.constant 0 : index
    %c0_6 = arith.constant 0 : index
    %3 = vector.load %arg5[%c0_5, %c0_6] : memref<1x256xf32, #tpu.memory_space<vmem>>, vector<1x256xf32>
    %c0_7 = arith.constant 0 : index
    %c0_8 = arith.constant 0 : index
    %4 = vector.load %arg1[%c0_7, %c0_8] : memref<256x256xbf16, #tpu.memory_space<vmem>>, vector<128x256xbf16>
    %cst = arith.constant dense<0.000000e+00> : vector<128x128xf32>
    %5 = tpu.matmul %4, %0, %cst {dimension_numbers = #tpu.dot_dimension_numbers<[1], [0], [0], [1], [0, 0, 1, 1], [], []>} : vector<128x256xbf16>, vector<256x128xbf16>, vector<128x128xf32> -> vector<128x128xf32>
    %6 = vector.broadcast %1 : vector<1x128xf32> to vector<128x128xf32>
    %7 = arith.addf %5, %6 : vector<128x128xf32>
    %cst_9 = arith.constant 5.000000e-01 : f32
    %8 = vector.broadcast %cst_9 : f32 to vector<128x128xf32>
    %9 = arith.mulf %8, %7 : vector<128x128xf32>
    %10 = math.tanh %9 : vector<128x128xf32>
    %cst_10 = arith.constant 5.000000e-01 : f32
    %11 = vector.broadcast %cst_10 : f32 to vector<128x128xf32>
    %12 = arith.mulf %11, %10 : vector<128x128xf32>
    %cst_11 = arith.constant 5.000000e-01 : f32
    %13 = vector.broadcast %cst_11 : f32 to vector<128x128xf32>
    %14 = arith.addf %12, %13 : vector<128x128xf32>
    %15 = arith.truncf %14 : vector<128x128xf32> to vector<128x128xbf16>
    %cst_12 = arith.constant dense<0.000000e+00> : vector<128x256xf32>
    %16 = tpu.matmul %15, %2, %cst_12 {dimension_numbers = #tpu.dot_dimension_numbers<[1], [0], [0], [1], [0, 0, 1, 1], [], []>} : vector<128x128xbf16>, vector<128x256xbf16>, vector<128x256xf32> -> vector<128x256xf32>
    %17 = vector.broadcast %3 : vector<1x256xf32> to vector<128x256xf32>
    %18 = arith.addf %16, %17 : vector<128x256xf32>
    %cst_13 = arith.constant 5.000000e-01 : f32
    %19 = vector.broadcast %cst_13 : f32 to vector<128x256xf32>
    %20 = arith.mulf %19, %18 : vector<128x256xf32>
    %21 = math.tanh %20 : vector<128x256xf32>
    %cst_14 = arith.constant 5.000000e-01 : f32
    %22 = vector.broadcast %cst_14 : f32 to vector<128x256xf32>
    %23 = arith.mulf %22, %21 : vector<128x256xf32>
    %cst_15 = arith.constant 5.000000e-01 : f32
    %24 = vector.broadcast %cst_15 : f32 to vector<128x256xf32>
    %25 = arith.addf %23, %24 : vector<128x256xf32>
    %c0_16 = arith.constant 0 : index
    %c0_17 = arith.constant 0 : index
    %26 = vector.load %arg6[%c0_16, %c0_17] : memref<256x256xf32, #tpu.memory_space<vmem>>, vector<128x256xf32>
    tpu.vector_store %arg6[%c0_16, %c0_17], %25 {strides = array<i32>} : memref<256x256xf32, #tpu.memory_space<vmem>>, vector<128x256xf32>,
    %c128 = arith.constant 128 : index
    %c0_18 = arith.constant 0 : index
    %27 = vector.load %arg1[%c128, %c0_18] : memref<256x256xbf16, #tpu.memory_space<vmem>>, vector<128x256xbf16>
    %cst_19 = arith.constant dense<0.000000e+00> : vector<128x128xf32>
    %28 = tpu.matmul %27, %0, %cst_19 {dimension_numbers = #tpu.dot_dimension_numbers<[1], [0], [0], [1], [0, 0, 1, 1], [], []>} : vector<128x256xbf16>, vector<256x128xbf16>, vector<128x128xf32> -> vector<128x128xf32>
    %29 = vector.broadcast %1 : vector<1x128xf32> to vector<128x128xf32>
    %30 = arith.addf %28, %29 : vector<128x128xf32>
    %cst_20 = arith.constant 5.000000e-01 : f32
    %31 = vector.broadcast %cst_20 : f32 to vector<128x128xf32>
    %32 = arith.mulf %31, %30 : vector<128x128xf32>
    %33 = math.tanh %32 : vector<128x128xf32>
    %cst_21 = arith.constant 5.000000e-01 : f32
    %34 = vector.broadcast %cst_21 : f32 to vector<128x128xf32>
    %35 = arith.mulf %34, %33 : vector<128x128xf32>
    %cst_22 = arith.constant 5.000000e-01 : f32
    %36 = vector.broadcast %cst_22 : f32 to vector<128x128xf32>
    %37 = arith.addf %35, %36 : vector<128x128xf32>
    %38 = arith.truncf %37 : vector<128x128xf32> to vector<128x128xbf16>
    %cst_23 = arith.constant dense<0.000000e+00> : vector<128x256xf32>
    %39 = tpu.matmul %38, %2, %cst_23 {dimension_numbers = #tpu.dot_dimension_numbers<[1], [0], [0], [1], [0, 0, 1, 1], [], []>} : vector<128x128xbf16>, vector<128x256xbf16>, vector<128x256xf32> -> vector<128x256xf32>
    %40 = vector.broadcast %3 : vector<1x256xf32> to vector<128x256xf32>
    %41 = arith.addf %39, %40 : vector<128x256xf32>
    %cst_24 = arith.constant 5.000000e-01 : f32
    %42 = vector.broadcast %cst_24 : f32 to vector<128x256xf32>
    %43 = arith.mulf %42, %41 : vector<128x256xf32>
    %44 = math.tanh %43 : vector<128x256xf32>
    %cst_25 = arith.constant 5.000000e-01 : f32
    %45 = vector.broadcast %cst_25 : f32 to vector<128x256xf32>
    %46 = arith.mulf %45, %44 : vector<128x256xf32>
    %cst_26 = arith.constant 5.000000e-01 : f32
    %47 = vector.broadcast %cst_26 : f32 to vector<128x256xf32>
    %48 = arith.addf %46, %47 : vector<128x256xf32>
    %c128_27 = arith.constant 128 : index
    %c0_28 = arith.constant 0 : index
    %49 = vector.load %arg6[%c128_27, %c0_28] : memref<256x256xf32, #tpu.memory_space<vmem>>, vector<128x256xf32>
    tpu.vector_store %arg6[%c128_27, %c0_28], %48 {strides = array<i32>} : memref<256x256xf32, #tpu.memory_space<vmem>>, vector<128x256xf32>,
    return
  }
  func.func @transform_0(%arg0: i32) -> (i32, i32) {
    %c0_i32 = arith.constant 0 : i32
    %c0_i32_0 = arith.constant 0 : i32
    return %arg0, %c0_i32 : i32, i32
  }
  func.func @transform_1(%arg0: i32) -> (i32, i32) {
    %c0_i32 = arith.constant 0 : i32
    %c0_i32_0 = arith.constant 0 : i32
    %c0_i32_1 = arith.constant 0 : i32
    return %c0_i32, %c0_i32_0 : i32, i32
  }
  func.func @transform_2(%arg0: i32) -> (i32, i32) {
    %c0_i32 = arith.constant 0 : i32
    %c0_i32_0 = arith.constant 0 : i32
    %c0_i32_1 = arith.constant 0 : i32
    return %c0_i32, %c0_i32_0 : i32, i32
  }
  func.func @transform_3(%arg0: i32) -> (i32, i32) {
    %c0_i32 = arith.constant 0 : i32
    %c0_i32_0 = arith.constant 0 : i32
    %c0_i32_1 = arith.constant 0 : i32
    return %c0_i32, %c0_i32_0 : i32, i32
  }
  func.func @transform_4(%arg0: i32) -> (i32, i32) {
    %c0_i32 = arith.constant 0 : i32
    %c0_i32_0 = arith.constant 0 : i32
    %c0_i32_1 = arith.constant 0 : i32
    return %c0_i32, %c0_i32_0 : i32, i32
  }
  func.func @transform_5(%arg0: i32) -> (i32, i32) {
    %c0_i32 = arith.constant 0 : i32
    %c0_i32_0 = arith.constant 0 : i32
    return %arg0, %c0_i32 : i32, i32
  }
}

</mosaic_0001>

<bundles_post_ra>
// kernel: tpu_custom_call.1
= control target key start
LH: loop header
LB: loop body
LE: loop exit
PB: predicated region body
PF: predicated region fallthrough
CT: control target
= control target key end

     0   :  { %10 = vsyncpa [#allocation3], 0  ;;  %s2904_s0 = inlined_call_operand.hbm [shape: bf16[512,256], index: 0, kind: input, shape index: {}]   ;;  %s2905_s1 = inlined_call_operand.hbm [shape: bf16[256,128], index: 1, kind: input, shape index: {}]   ;;  %s2906_s2 = inlined_call_operand.vmem [shape: f32[1,128], index: 2, kind: input, shape index: {}]   ;;  %s2907_s3 = inlined_call_operand.hbm [shape: bf16[128,256], index: 3, kind: input, shape index: {}]   ;;  %s2908_s4 = inlined_call_operand.vmem [shape: f32[1,256], index: 4, kind: input, shape index: {}]   ;;  %s2909_s5 = inlined_call_operand.hbm [shape: f32[512,256], index: 5, kind: output, shape index: {}]  }
   0x1   :  { %12 = vsyncpa [#allocation3 + $0x1], 0 }
   0x2   :  { %13 = vsyncpa [#allocation6], 0 }
   0x3   :  { %14 = vsyncpa [#allocation4], 0 }
   0x4   :  { %16 = vsyncpa [#allocation4 + $0x1], 0  ;;  %s2483_s18 = smov 0   ;;  %s2485_s19 = smov 0  }
   0x5   :  { %s2487_s20 = smov 0   ;;  %s2489_s21 = smov 0  }
   0x6 LB: > { %s2504_s22 = sadd.s32 4294967295, %s2443_s21   ;;  %s1672_s23 = sadd.s32 4294967294, %s2443_s21   ;;  %s2443_s21 = sphi %s2489_s21, %s2921_s21   ;;  %s2439_s20 = sphi %s2487_s20, %s2920_s20   ;;  %s2435_s19 = sphi %s2485_s19, %s2919_s19   ;;  %s2431_s18 = sphi %s2483_s18, %s2918_s18  }
   0x7   : > { %p42_p0 = scmp.ne.s32.totalorder %s2435_s19, %s2431_s18  ;;  %p43_p1 = scmp.eq.s32.totalorder %s2504_s22, 0 }
   0x8   : > { %p150_p2 = scmp.eq.s32.totalorder %s2504_s22, 1  ;;  %p156_p3 = scmp.eq.s32.totalorder %s1672_s23, 1 }
   0x9   : > { %p2513_p4 = por %p43_p1, %p42_p0  ;;  %p1673_p5 = scmp.ge.s32.totalorder %s2443_s21, 1 }
   0xa   : > { %p2518_p6 = por %p156_p3, %p42_p0  ;;  %p163_p7 = scmp.lt.s32.totalorder %s2443_s21, 3 }
   0xb   : > { %s174_s28 = sshll.u32 %s2905_s1, 4  ;;  %s2445_s30 = smov [#allocation5]   ;;  %s175_s28 = int_to_ptr.hbm [resolvable:$true] %s174_s28 }
   0xc   : > { %p2526_p8 = pnand %p1673_p5, %p163_p7  ;;  %s176_s6 = sshll.u32 %s2445_s30, 4  ;;  %s177_s6 = int_to_ptr.vmem [resolvable:$true] %s176_s6 }
   0xd   : > { %s191_s9 = sshll.u32 %s2907_s3, 4  ;;  %s2446_s10 = smov 64   ;;  %s192_s9 = int_to_ptr.hbm [resolvable:$true] %s191_s9 }
   0xe   : > { %p2028_p9 = pneg %p2526_p8  ;;  %s2447_s11 = smov 4  }
   0xf   : > { %s2448_s12 = smov [#allocation7]   ;;  %s2910_s14 = smov 128  }
  0x10   : > { %p2029_p10 = pnand %p2028_p9, %p43_p1  ;;  %s193_s13 = sshll.u32 %s2448_s12, 4  ;;  %s194_s13 = int_to_ptr.vmem [resolvable:$true] %s193_s13 }
  0x11   : > { %s2450_s15 = smov 8   ;;  %s2542_s16 = sadd.s32 1, %s2443_s21  }
  0x12   : > { %2031 = dma.hbm_to_vmem [thread:$0]  (!%p2029_p10), %s175_s28, 2048, %s177_s6, [#allocation6], %s2446_s10, %s2446_s10, %s2447_s11  }
  0x13   : > { %2034 = dma.hbm_to_vmem [thread:$0]  (!%p2029_p10), %s192_s9, 2048, %s194_s13, [#allocation6], %s2910_s14, %s2910_s14, %s2450_s15  }
  0x14   : > { %s26_s17 = ssub.s32 %s2443_s21, %s2542_s16  ;;  %s29_s23 = sadd.s32 1, %s2439_s20 }
  0x15   : > { %p27_p12 = scmp.eq.s32.totalorder %s26_s17, 0  ;;  %p36_p13 = scmp.ne.s32.totalorder %s2439_s20, %s2435_s19 }
  0x16   : > { %p37_p0 = scmp.eq.s32.totalorder %s2443_s21, 0  ;;  %p2045_p7 = scmp.lt.s32.totalorder %s2443_s21, 2 }
  0x17   : > { %s2551_s26 = scalar_select %p27_p12, %s2439_s20, %s29_s23  }
  0x18   : > { %p38_p3 = por %p37_p0, %p36_p13  ;;  %p2555_p5 = por %p150_p2, %p36_p13 }
  0x19   : > { %s210_s28 = sand.u32 1, %s2439_s20   ;;  %s1949_s6 = sshll.u32 %s2443_s21, 8 }
  0x1a   : > { %s1677_s30 = sshll.u32 %s210_s28, 8  ;;  %s220_s9 = scalar_lea.hbm %s2904_s0, %s1949_s6 }
  0x1b   : > { %s214_s10 = scalar_lea.vmem [#allocation2], %s1677_s30  ;;  %s221_s12 = sshll.u32 %s220_s9, 4  ;;  %s222_s12 = int_to_ptr.hbm [resolvable:$true] %s221_s12 }
  0x1c   : > { %s223_s11 = sshll.u32 %s214_s10, 4  ;;  %p2565_p9 = pnand %p2045_p7, %p38_p3  ;;  %s224_s11 = int_to_ptr.vmem [resolvable:$true] %s223_s11 }
  0x1d   : > { %s211_s17 = scalar_lea.sflag [#allocation3], %s210_s28  ;;  %s2343_s23 = sshra.s32 %s222_s12, 4  ;;  %s2344_s23 = int_to_ptr.hbm [resolvable:$true] %s2343_s23 }
  0x1e   : > { %s2345_s14 = scalar_lea.hbm %s2344_s23, 256  ;;  %p2347_p10 = pneg %p2565_p9 }
  0x1f   : > { %p2346_p2 = scmp.ne.s32.totalorder %s2344_s23, %s2345_s14  ;;  %s2350_s7 = scalar_lea.hbm %s2904_s0, 512 }
  0x20   : > { %p2351_p0 = scmp.lt.s32.totalorder %s2344_s23, %s2904_s0  ;;  %p2352_p3 = scmp.lt.s32.totalorder %s2350_s7, %s2345_s14 }
  0x21   : > { %p2348_p12 = pnand %p2347_p10, %p2346_p2 }
  0x22   : > { %p2353_p7 = por %p2352_p3, %p2351_p0 }
  0x23   : > { %p2349_p13 = pneg %p2348_p12 }
  0x25   : > { %p2354_p11 = pnand %p2353_p7, %p2349_p13 }
  0x27   : > { %2357 = shalt.err (!%p2354_p11)
}
  0x28   : > { %s2916_s28 = smov 128   ;;  %235 = sbr.rel (%p2526_p8) target bundleno = 633 (0x279), region = 40 }
  0x29   : > { %2038 = dma.hbm_to_vmem [thread:$0]  (!%p2565_p9), %s222_s12, 4096, %s224_s11, %s211_s17, %s2916_s28, %s2916_s28, %s2450_s15  }
  0x2a   : > { %s2585_s10 = sand.u32 (!%p2526_p8), 1, %s2435_s19  }
  0x2b   : > { %s1682_s23 = sshll.u32 (!%p2526_p8), %s2585_s10, 8  ;;  %s238_s14 = scalar_lea.sflag (!%p2526_p8), [#allocation3], %s2585_s10 }
  0x2c   : > { %s2589_s6 = scalar_lea.vmem (!%p2526_p8), [#allocation2], %s1682_s23 }
  0x2d   : > { %2418 = dma.done.wait (%p2513_p4), %s238_s14, 4096  }
  0x2e   : > { %2420 = vsyncadd (%p2513_p4), %s238_s14, 4294963200 }
  0x2f   : > { %2422 = dma.done.wait (%p43_p1), [#allocation6], 4096  }
  0x30   : > { %2424 = vsyncadd (%p43_p1), [#allocation6], 4294963200  ;;  %v1957_v0 = vld [vmem:[#allocation5 + $0x38] sm:$0xff]  ;;  %v1956_v2 = vld [vmem:[#allocation5 + $0x30] sm:$0xff]  ;;  %s1685_s12 = sshll.u32 %s2585_s10, 9  ;;  %s2015_s7 = sshll.u32 %s2504_s22, 9 }
  0x31   : > { %v1965_v1 = vld [vmem:[#allocation5 + $0x78] sm:$0xff]  ;;  %526 = vmatpush.bf16.msra.mxu0 %v1957_v0  ;;  %v1964_v3 = vld [vmem:[#allocation5 + $0x70] sm:$0xff]  ;;  %v1955_v4 = vld [vmem:[#allocation5 + $0x28] sm:$0xff]  ;;  %s2734_s13 = scalar_lea.vmem [#allocation8], %s1685_s12  ;;  %s1576_s28 = scalar_lea.hbm %s2909_s5, %s2015_s7 }
  0x32   : > { %575 = vmatpush.bf16.msra.mxu1 %v1965_v1  ;;  %v1963_v5 = vld [vmem:[#allocation5 + $0x68] sm:$0xff]  ;;  %v1954_v6 = vld [vmem:[#allocation5 + $0x20] sm:$0xff]  ;;  %v1953_v8 = vld [vmem:[#allocation5 + $0x18] sm:$0xff]  ;;  %s1577_s23 = sshll.u32 %s2734_s13, 4  ;;  %s1579_s14 = sshll.u32 %s1576_s28, 4  ;;  %s1578_s23 = int_to_ptr.vmem [resolvable:$true] %s1577_s23  ;;  %s1580_s14 = int_to_ptr.hbm [resolvable:$true] %s1579_s14 }
  0x33   : > { %v1962_v7 = vld [vmem:[#allocation5 + $0x60] sm:$0xff]  ;;  %v1961_v9 = vld [vmem:[#allocation5 + $0x58] sm:$0xff]  ;;  %v1952_v10 = vld [vmem:[#allocation5 + $0x10] sm:$0xff]  ;;  %s1564_s22 = scalar_lea.sflag [#allocation4], %s2585_s10  ;;  %s2393_s11 = scalar_lea.hbm %s2909_s5, 1024 }
  0x34   : > { %v1960_v11 = vld [vmem:[#allocation5 + $0x50] sm:$0xff]  ;;  %v1951_v12 = vld [vmem:[#allocation5 + $0x8] sm:$0xff]  ;;  %v1950_v14 = vld [vmem:[#allocation5] sm:$0xff] }
  0x35   : > { %527 = vmatpush.bf16.msra.mxu0 %v1956_v2  ;;  %v1959_v13 = vld [vmem:[#allocation5 + $0x48] sm:$0xff]  ;;  %v1958_v15 = vld [vmem:[#allocation5 + $0x40] sm:$0xff]  ;;  %v1696_v22 = vld [vmem:[%s2589_s6 + $0x10] sm:$0xf] }
  0x36   : > { %576 = vmatpush.bf16.msra.mxu1 %v1964_v3  ;;  %v1688_v16 = vld [vmem:[%s2589_s6] sm:$0xf]  ;;  %v1983_v17 = vld [vmem:[%s2589_s6 + $0x4] sm:$0xf0]  ;;  %v1982_v18 = vld [vmem:[%s2589_s6 + $0x4] sm:$0xf] }
  0x37   : > { %v1690_v19 = vld [vmem:[%s2589_s6 + $0x8] sm:$0xf0]  ;;  %v1689_v20 = vor.u32 %v1983_v17, %v1688_v16  ;;  %v1985_v23 = vld [vmem:[%s2589_s6 + $0x14] sm:$0xf0]  ;;  %v1984_v24 = vld [vmem:[%s2589_s6 + $0x14] sm:$0xf] }
  0x38   : > { %v1693_v21 = vor.u32 %v1982_v18, %v1690_v19  ;;  %v1698_v25 = vld [vmem:[%s2589_s6 + $0x18] sm:$0xf0]  ;;  %v1697_v26 = vor.u32 %v1985_v23, %v1696_v22  ;;  %v1704_v28 = vld [vmem:[%s2589_s6 + $0x20] sm:$0xf]  ;;  %v1987_v29 = vld [vmem:[%s2589_s6 + $0x24] sm:$0xf0] }
  0x39   : > { %528 = vmatpush.bf16.msra.mxu0 %v1955_v4  ;;  %v1701_v27 = vor.u32 %v1984_v24, %v1698_v25  ;;  %v1986_v30 = vld [vmem:[%s2589_s6 + $0x24] sm:$0xf]  ;;  %v1706_v31 = vld [vmem:[%s2589_s6 + $0x28] sm:$0xf0]  ;;  %v1705_v32 = vor.u32 %v1987_v29, %v1704_v28  ;;  %v1712_v34 = vld [vmem:[%s2589_s6 + $0x30] sm:$0xf] }
  0x3a   : > { %577 = vmatpush.bf16.msra.mxu1 %v1963_v5  ;;  %v1709_v33 = vor.u32 %v1986_v30, %v1706_v31  ;;  %v1989_v35 = vld [vmem:[%s2589_s6 + $0x34] sm:$0xf0]  ;;  %v1988_v36 = vld [vmem:[%s2589_s6 + $0x34] sm:$0xf]  ;;  %v1714_v37 = vld [vmem:[%s2589_s6 + $0x38] sm:$0xf0] }
  0x3b   : > { %v1713_v38 = vor.u32 %v1989_v35, %v1712_v34  ;;  %v1717_v39 = vor.u32 %v1988_v36, %v1714_v37  ;;  %v1720_v40 = vld [vmem:[%s2589_s6 + $0x40] sm:$0xf]  ;;  %v1991_v41 = vld [vmem:[%s2589_s6 + $0x44] sm:$0xf0]  ;;  %v1990_v42 = vld [vmem:[%s2589_s6 + $0x44] sm:$0xf] }
  0x3c   : > { %v1722_v43 = vld [vmem:[%s2589_s6 + $0x48] sm:$0xf0]  ;;  %v1721_v44 = vor.u32 %v1991_v41, %v1720_v40  ;;  %v1728_v46 = vld [vmem:[%s2589_s6 + $0x50] sm:$0xf]  ;;  %v1993_v47 = vld [vmem:[%s2589_s6 + $0x54] sm:$0xf0] }
  0x3d   : > { %529 = vmatpush.bf16.msra.mxu0 %v1954_v6  ;;  %v1725_v45 = vor.u32 %v1990_v42, %v1722_v43  ;;  %v1992_v48 = vld [vmem:[%s2589_s6 + $0x54] sm:$0xf]  ;;  %v1730_v49 = vld [vmem:[%s2589_s6 + $0x58] sm:$0xf0]  ;;  %v1729_v50 = vor.u32 %v1993_v47, %v1728_v46  ;;  %v1872_v52 = vld [vmem:[#allocation7 + $0x70] sm:$0xf] }
  0x3e   : > { %578 = vmatpush.bf16.msra.mxu1 %v1962_v7  ;;  %v1733_v51 = vor.u32 %v1992_v48, %v1730_v49  ;;  %v1981_v53 = vld [vmem:[#allocation7 + $0x74] sm:$0xf0]  ;;  %v1980_v54 = vld [vmem:[#allocation7 + $0x74] sm:$0xf]  ;;  %v1874_v56 = vld [vmem:[#allocation7 + $0x78] sm:$0xf0] }
  0x3f   : > { %v2623_v55 = vor.u32 %v1981_v53, %v1872_v52  ;;  %v2625_v57 = vor.u32 %v1980_v54, %v1874_v56  ;;  %v1736_v58 = vld [vmem:[%s2589_s6 + $0x60] sm:$0xf]  ;;  %v1995_v59 = vld [vmem:[%s2589_s6 + $0x64] sm:$0xf0]  ;;  %v1994_v60 = vld [vmem:[%s2589_s6 + $0x64] sm:$0xf] }
  0x40   : > { %v1738_v61 = vld [vmem:[%s2589_s6 + $0x68] sm:$0xf0]  ;;  %v1864_v62 = vld [vmem:[#allocation7 + $0x60] sm:$0xf]  ;;  %v1979_v63 = vld [vmem:[#allocation7 + $0x64] sm:$0xf0] }
  0x41   : > { %530 = vmatpush.bf16.msra.mxu0 %v1953_v8  ;;  %781 = vmatpush.bf16.msra.mxu2 %v2623_v55  ;;  %v1850_v16 = vld [vmem:[#allocation7 + $0x48] sm:$0xf0]  ;;  %v1840_v18 = vld [vmem:[#allocation7 + $0x30] sm:$0xf]  ;;  %v1973_v19 = vld [vmem:[#allocation7 + $0x34] sm:$0xf0] }
  0x42   : > { %579 = vmatpush.bf16.msra.mxu1 %v1961_v9  ;;  %830 = vmatpush.bf16.msra.mxu3 %v2625_v57  ;;  %v1841_v22 = vor.u32 %v1973_v19, %v1840_v18  ;;  %v1842_v23 = vld [vmem:[#allocation7 + $0x38] sm:$0xf0]  ;;  %v1997_v24 = vld [vmem:[%s2589_s6 + $0x74] sm:$0xf0]  ;;  %v1996_v25 = vld [vmem:[%s2589_s6 + $0x74] sm:$0xf] }
  0x43   : > { %v1832_v28 = vld [vmem:[#allocation7 + $0x20] sm:$0xf]  ;;  %v1971_v29 = vld [vmem:[#allocation7 + $0x24] sm:$0xf0]  ;;  %v1970_v30 = vld [vmem:[#allocation7 + $0x24] sm:$0xf] }
  0x44   : > { %v1834_v34 = vld [vmem:[#allocation7 + $0x28] sm:$0xf0]  ;;  %v1824_v36 = vld [vmem:[#allocation7 + $0x10] sm:$0xf]  ;;  %v1969_v37 = vld [vmem:[#allocation7 + $0x14] sm:$0xf0] }
  0x45   : > { %531 = vmatpush.bf16.msra.mxu0 %v1952_v10  ;;  %v1837_v35 = vor.u32 %v1970_v30, %v1834_v34  ;;  %v1826_v40 = vld [vmem:[#allocation7 + $0x18] sm:$0xf0]  ;;  %v1816_v42 = vld [vmem:[#allocation7] sm:$0xf]  ;;  %v1967_v43 = vld [vmem:[#allocation7 + $0x4] sm:$0xf0] }
  0x46   : > { %580 = vmatpush.bf16.msra.mxu1 %v1960_v11  ;;  %v1818_v46 = vld [vmem:[#allocation7 + $0x8] sm:$0xf0]  ;;  %v1880_v48 = vld [vmem:[%s2589_s6 + $0x80] sm:$0xf]  ;;  %v1999_v49 = vld [vmem:[%s2589_s6 + $0x84] sm:$0xf0] }
  0x47   : > { %v2664_v52 = vld [vmem:[%s2906_s2] ss:$0 sm:$0xff]  ;;  %v1881_v53 = vor.u32 %v1999_v49, %v1880_v48  ;;  %v2004_v48 = vld [vmem:[%s2589_s6 + $0xb4] sm:$0xf]  ;;  %v1906_v49 = vld [vmem:[%s2589_s6 + $0xb8] sm:$0xf0] }
  0x49   : > { %532 = vmatpush.bf16.msra.mxu0 %v1951_v12 }
  0x4a   : > { %581 = vmatpush.bf16.msra.mxu1 %v1959_v13 }
  0x4d   : > { %533 = vmatpush.bf16.msra.mxu0 %v1950_v14 }
  0x4e   : > { %582 = vmatpush.bf16.msra.mxu1 %v1958_v15 }
  0x50   : > { %534 = vmatmul.bf16.vlgmr.msra.gmra.mxu0 %v1689_v20  ;;  %v1972_v20 = vld [vmem:[#allocation7 + $0x34] sm:$0xf] }
  0x51   : > { %1135 = vmatpush.bf16.msrb.mxu0 %v1957_v0  ;;  %583 = vmatmul.bf16.vlgmr.msra.gmra.mxu1 %v1693_v21  ;;  %v1978_v0 = vld [vmem:[#allocation7 + $0x64] sm:$0xf]  ;;  %v1744_v21 = vld [vmem:[%s2589_s6 + $0x70] sm:$0xf] }
  0x52   : > { %1184 = vmatpush.bf16.msrb.mxu1 %v1965_v1  ;;  %v1737_v1 = vor.u32 %v1995_v59, %v1736_v58  ;;  %v1745_v31 = vor.u32 %v1997_v24, %v1744_v21  ;;  %v2003_v24 = vld [vmem:[%s2589_s6 + $0xa4] sm:$0xf0] }
  0x55   : > { %1136 = vmatpush.bf16.msrb.mxu0 %v1956_v2  ;;  %v1741_v2 = vor.u32 %v1994_v60, %v1738_v61 }
  0x56   : > { %1185 = vmatpush.bf16.msrb.mxu1 %v1964_v3  ;;  %v2633_v3 = vor.u32 %v1979_v63, %v1864_v62 }
  0x58   : > { %782 = vmatpush.bf16.msra.mxu2 %v2633_v3 }
  0x59   : > { %1137 = vmatpush.bf16.msrb.mxu0 %v1955_v4  ;;  %v1866_v4 = vld [vmem:[#allocation7 + $0x68] sm:$0xf0] }
  0x5a   : > { %1186 = vmatpush.bf16.msrb.mxu1 %v1963_v5  ;;  %v2635_v5 = vor.u32 %v1978_v0, %v1866_v4  ;;  %v1888_v0 = vld [vmem:[%s2589_s6 + $0x90] sm:$0xf] }
  0x5c   : > { %831 = vmatpush.bf16.msra.mxu3 %v2635_v5 }
  0x5d   : > { %1138 = vmatpush.bf16.msrb.mxu0 %v1954_v6  ;;  %v1856_v6 = vld [vmem:[#allocation7 + $0x50] sm:$0xf] }
  0x5e   : > { %1187 = vmatpush.bf16.msrb.mxu1 %v1962_v7  ;;  %v1977_v7 = vld [vmem:[#allocation7 + $0x54] sm:$0xf0] }
  0x60   : > { %539 = vmatmul.bf16.gmra.mxu0 %v1697_v26  ;;  %v1746_v26 = vld [vmem:[%s2589_s6 + $0x78] sm:$0xf0] }
  0x61   : > { %1139 = vmatpush.bf16.msrb.mxu0 %v1953_v8  ;;  %588 = vmatmul.bf16.gmra.mxu1 %v1701_v27  ;;  %v1976_v8 = vld [vmem:[#allocation7 + $0x54] sm:$0xf]  ;;  %v1845_v27 = vor.u32 %v1972_v20, %v1842_v23  ;;  %v1896_v23 = vld [vmem:[%s2589_s6 + $0xa0] sm:$0xf] }
  0x62   : > { %1188 = vmatpush.bf16.msrb.mxu1 %v1961_v9  ;;  %v2639_v9 = vor.u32 %v1977_v7, %v1856_v6 }
  0x64   : > { %783 = vmatpush.bf16.msra.mxu2 %v2639_v9 }
  0x65   : > { %1140 = vmatpush.bf16.msrb.mxu0 %v1952_v10  ;;  %v1858_v10 = vld [vmem:[#allocation7 + $0x58] sm:$0xf0] }
  0x66   : > { %1189 = vmatpush.bf16.msrb.mxu1 %v1960_v11  ;;  %v2641_v11 = vor.u32 %v1976_v8, %v1858_v10 }
  0x68   : > { %832 = vmatpush.bf16.msra.mxu3 %v2641_v11 }
  0x69   : > { %1141 = vmatpush.bf16.msrb.mxu0 %v1951_v12  ;;  %v1848_v12 = vld [vmem:[#allocation7 + $0x40] sm:$0xf] }
  0x6a   : > { %1190 = vmatpush.bf16.msrb.mxu1 %v1959_v13  ;;  %v1975_v13 = vld [vmem:[#allocation7 + $0x44] sm:$0xf0] }
  0x6d   : > { %1142 = vmatpush.bf16.msrb.mxu0 %v1950_v14  ;;  %v1974_v14 = vld [vmem:[#allocation7 + $0x44] sm:$0xf] }
  0x6e   : > { %1191 = vmatpush.bf16.msrb.mxu1 %v1958_v15  ;;  %v2645_v15 = vor.u32 %v1975_v13, %v1848_v12  ;;  %v2647_v17 = vor.u32 %v1974_v14, %v1850_v16 }
  0x70   : > { %544 = vmatmul.bf16.gmra.mxu0 %v1705_v32  ;;  %784 = vmatpush.bf16.msra.mxu2 %v2645_v15  ;;  %v1749_v32 = vor.u32 %v1996_v25, %v1746_v26  ;;  %v2002_v25 = vld [vmem:[%s2589_s6 + $0xa4] sm:$0xf]  ;;  %v1898_v26 = vld [vmem:[%s2589_s6 + $0xa8] sm:$0xf0] }
  0x71   : > { %593 = vmatmul.bf16.gmra.mxu1 %v1709_v33  ;;  %833 = vmatpush.bf16.msra.mxu3 %v2647_v17  ;;  %v1833_v33 = vor.u32 %v1971_v29, %v1832_v28  ;;  %v1897_v28 = vor.u32 %v2003_v24, %v1896_v23  ;;  %v1901_v29 = vor.u32 %v2002_v25, %v1898_v26 }
  0x74   : > { %785 = vmatpush.bf16.msra.mxu2 %v1841_v22 }
  0x75   : > { %834 = vmatpush.bf16.msra.mxu3 %v1845_v27 }
  0x78   : > { %786 = vmatpush.bf16.msra.mxu2 %v1833_v33 }
  0x79   : > { %835 = vmatpush.bf16.msra.mxu3 %v1837_v35 }
  0x80   : > { %549 = vmatmul.bf16.gmra.mxu0 %v1713_v38  ;;  %v1968_v38 = vld [vmem:[#allocation7 + $0x14] sm:$0xf] }
  0x81   : > { %598 = vmatmul.bf16.gmra.mxu1 %v1717_v39  ;;  %v1825_v39 = vor.u32 %v1969_v37, %v1824_v36  ;;  %v1829_v41 = vor.u32 %v1968_v38, %v1826_v40 }
  0x83   : > { %787 = vmatpush.bf16.msra.mxu2 %v1825_v39  ;;  %836 = vmatpush.bf16.msra.mxu3 %v1829_v41 }
  0x90   : > { %554 = vmatmul.bf16.gmra.mxu0 %v1721_v44  ;;  %v1966_v44 = vld [vmem:[#allocation7 + $0x4] sm:$0xf] }
  0x91   : > { %603 = vmatmul.bf16.gmra.mxu1 %v1725_v45  ;;  %v1817_v45 = vor.u32 %v1967_v43, %v1816_v42  ;;  %v1821_v47 = vor.u32 %v1966_v44, %v1818_v46  ;;  %v1904_v46 = vld [vmem:[%s2589_s6 + $0xb0] sm:$0xf] }
  0x93   : > { %788 = vmatpush.bf16.msra.mxu2 %v1817_v45  ;;  %837 = vmatpush.bf16.msra.mxu3 %v1821_v47 }
  0x97   : > { %1305 = vmatpush.bf16.msrb.mxu2 %v2623_v55  ;;  %1354 = vmatpush.bf16.msrb.mxu3 %v2625_v57 }
  0x9b   : > { %1306 = vmatpush.bf16.msrb.mxu2 %v2633_v3  ;;  %1355 = vmatpush.bf16.msrb.mxu3 %v2635_v5  ;;  %v1890_v3 = vld [vmem:[%s2589_s6 + $0x98] sm:$0xf0] }
  0x9f   : > { %1307 = vmatpush.bf16.msrb.mxu2 %v2639_v9  ;;  %1356 = vmatpush.bf16.msrb.mxu3 %v2641_v11 }
  0xa0   : > { %559 = vmatmul.bf16.gmra.mxu0 %v1729_v50  ;;  %v1998_v50 = vld [vmem:[%s2589_s6 + $0x84] sm:$0xf] }
  0xa1   : > { %608 = vmatmul.bf16.gmra.mxu1 %v1733_v51  ;;  %v1882_v51 = vld [vmem:[%s2589_s6 + $0x88] sm:$0xf0] }
  0xa2   : > { %v1885_v54 = vor.u32 %v1998_v50, %v1882_v51 }
  0xa3   : > { %1308 = vmatpush.bf16.msrb.mxu2 %v2645_v15  ;;  %1357 = vmatpush.bf16.msrb.mxu3 %v2647_v17 }
  0xa7   : > { %1309 = vmatpush.bf16.msrb.mxu2 %v1841_v22  ;;  %1358 = vmatpush.bf16.msrb.mxu3 %v1845_v27 }
  0xab   : > { %1310 = vmatpush.bf16.msrb.mxu2 %v1833_v33  ;;  %1359 = vmatpush.bf16.msrb.mxu3 %v1837_v35 }
  0xaf   : > { %1311 = vmatpush.bf16.msrb.mxu2 %v1825_v39  ;;  %1360 = vmatpush.bf16.msrb.mxu3 %v1829_v41 }
  0xb0   : > { %564 = vmatmul.bf16.gmra.mxu0 %v1737_v1  ;;  %v2001_v1 = vld [vmem:[%s2589_s6 + $0x94] sm:$0xf0] }
  0xb1   : > { %613 = vmatmul.bf16.gmra.mxu1 %v1741_v2  ;;  %v2000_v2 = vld [vmem:[%s2589_s6 + $0x94] sm:$0xf]  ;;  %v1889_v5 = vor.u32 %v2001_v1, %v1888_v0 }
  0xb2   : > { %v1893_v6 = vor.u32 %v2000_v2, %v1890_v3 }
  0xb3   : > { %1312 = vmatpush.bf16.msrb.mxu2 %v1817_v45  ;;  %1361 = vmatpush.bf16.msrb.mxu3 %v1821_v47  ;;  %v2005_v47 = vld [vmem:[%s2589_s6 + $0xb4] sm:$0xf0] }
  0xb4   : > { %v1905_v51 = vor.u32 %v2005_v47, %v1904_v46 }
  0xc0   : > { %569 = vmatmul.bf16.gmra.mxu0 %v1745_v31 }
  0xc1   : > { %618 = vmatmul.bf16.gmra.mxu1 %v1749_v32 }
  0xcd   : > { %v535_v56 = vpop.f32.mrf.mxu0 }
  0xce   : > { %v584_v58 = vpop.f32.mrf.mxu1  ;;  %v536_v55 = vadd.f32 %v2664_v52, %v535_v56 }
  0xd0   : > { %v585_v57 = vadd.f32 %v584_v58, %v536_v55  ;;  %1143 = vmatmul.bf16.vlgmr.msrb.gmra.mxu0 %v1881_v53  ;;  %v1909_v53 = vor.u32 %v2004_v48, %v1906_v49 }
  0xd1   : > { %1192 = vmatmul.bf16.vlgmr.msrb.gmra.mxu1 %v1885_v54 }
  0xd2   : > { %v624_v59 = vmul.f32 0.5, %v585_v57 }
  0xd4   : > { %2090 = vtanh.f32 %v624_v59 }
  0xd5   : > { %v537_v60 = vpop.f32.mrf.mxu0 }
  0xd6   : > { %v586_v61 = vpop.f32.mrf.mxu1  ;;  %v538_v62 = vadd.f32 %v2664_v52, %v537_v60 }
  0xd8   : > { %v587_v63 = vadd.f32 %v586_v61, %v538_v62 }
  0xda   : > { %v625_v4 = vmul.f32 0.5, %v587_v63  ;;  %v2091_v9 = vpop.eup %2090 }
  0xdb   : > { %v656_v12 = vmul.f32 0.5, %v2091_v9  ;;  %v1914_v9 = vld [vmem:[%s2589_s6 + $0xc8] sm:$0xf0] }
  0xdc   : > { %2092 = vtanh.f32 %v625_v4 }
  0xdd   : > { %v540_v7 = vpop.f32.mrf.mxu0  ;;  %v672_v18 = vadd.f32 0.5, %v656_v12 }
  0xde   : > { %v589_v8 = vpop.f32.mrf.mxu1  ;;  %v541_v10 = vadd.f32 %v2664_v52, %v540_v7  ;;  %v2007_v7 = vld [vmem:[%s2589_s6 + $0xc4] sm:$0xf0] }
  0xe0   : > { %v590_v11 = vadd.f32 %v589_v8, %v541_v10  ;;  %1148 = vmatmul.bf16.gmra.mxu0 %v1889_v5  ;;  %v2006_v8 = vld [vmem:[%s2589_s6 + $0xc4] sm:$0xf] }
  0xe1   : > { %1197 = vmatmul.bf16.gmra.mxu1 %v1893_v6  ;;  %v1912_v6 = vld [vmem:[%s2589_s6 + $0xc0] sm:$0xf]  ;;  %v1917_v12 = vor.u32 %v2006_v8, %v1914_v9 }
  0xe2   : > { %v2093_v13 = vpop.eup %2092  ;;  %v626_v15 = vmul.f32 0.5, %v590_v11  ;;  %v1913_v11 = vor.u32 %v2007_v7, %v1912_v6 }
  0xe3   : > { %v657_v14 = vmul.f32 0.5, %v2093_v13 }
  0xe4   : > { %2094 = vtanh.f32 %v626_v15 }
  0xe5   : > { %v542_v16 = vpop.f32.mrf.mxu0  ;;  %v673_v19 = vadd.f32 0.5, %v657_v14 }
  0xe6   : > { %v591_v17 = vpop.f32.mrf.mxu1  ;;  %v543_v20 = vadd.f32 %v2664_v52, %v542_v16 }
  0xe7   : > { %v688_v21 = vpack.c.bf16 %v673_v19, %v672_v18 }
  0xe8   : > { %v592_v22 = vadd.f32 %v591_v17, %v543_v20 }
  0xe9   : > { %789 = vmatmul.bf16.vlgmr.msra.gmra.mxu2 %v688_v21  ;;  %838 = vmatmul.bf16.vlgmr.msra.gmra.mxu3 %v688_v21 }
  0xea   : > { %v627_v27 = vmul.f32 0.5, %v592_v22  ;;  %v2095_v32 = vpop.eup %2094 }
  0xeb   : > { %v658_v35 = vmul.f32 0.5, %v2095_v32  ;;  %v1922_v32 = vld [vmem:[%s2589_s6 + $0xd8] sm:$0xf0] }
  0xec   : > { %2096 = vtanh.f32 %v627_v27 }
  0xed   : > { %v545_v30 = vpop.f32.mrf.mxu0  ;;  %v674_v41 = vadd.f32 0.5, %v658_v35 }
  0xee   : > { %v594_v31 = vpop.f32.mrf.mxu1  ;;  %v546_v33 = vadd.f32 %v2664_v52, %v545_v30  ;;  %v2009_v30 = vld [vmem:[%s2589_s6 + $0xd4] sm:$0xf0] }
  0xf0   : > { %v595_v34 = vadd.f32 %v594_v31, %v546_v33  ;;  %1153 = vmatmul.bf16.gmra.mxu0 %v1897_v28  ;;  %v2008_v31 = vld [vmem:[%s2589_s6 + $0xd4] sm:$0xf] }
  0xf1   : > { %1202 = vmatmul.bf16.gmra.mxu1 %v1901_v29  ;;  %v1920_v29 = vld [vmem:[%s2589_s6 + $0xd0] sm:$0xf]  ;;  %v1925_v35 = vor.u32 %v2008_v31, %v1922_v32 }
  0xf2   : > { %v2097_v36 = vpop.eup %2096  ;;  %v628_v38 = vmul.f32 0.5, %v595_v34  ;;  %v1921_v34 = vor.u32 %v2009_v30, %v1920_v29 }
  0xf3   : > { %v659_v37 = vmul.f32 0.5, %v2097_v36 }
  0xf4   : > { %2098 = vtanh.f32 %v628_v38 }
  0xf5   : > { %v547_v39 = vpop.f32.mrf.mxu0  ;;  %v675_v42 = vadd.f32 0.5, %v659_v37 }
  0xf6   : > { %v596_v40 = vpop.f32.mrf.mxu1  ;;  %v548_v43 = vadd.f32 %v2664_v52, %v547_v39 }
  0xf7   : > { %v689_v44 = vpack.c.bf16 %v675_v42, %v674_v41 }
  0xf8   : > { %v597_v45 = vadd.f32 %v596_v40, %v548_v43 }
  0xf9   : > { %794 = vmatmul.bf16.gmra.mxu2 %v689_v44  ;;  %843 = vmatmul.bf16.gmra.mxu3 %v689_v44 }
  0xfa   : > { %v629_v50 = vmul.f32 0.5, %v597_v45  ;;  %v2099_v58 = vpop.eup %2098 }
  0xfb   : > { %v660_v59 = vmul.f32 0.5, %v2099_v58  ;;  %v1930_v58 = vld [vmem:[%s2589_s6 + $0xe8] sm:$0xf0] }
  0xfc   : > { %2100 = vtanh.f32 %v629_v50 }
  0xfd   : > { %v550_v54 = vpop.f32.mrf.mxu0  ;;  %v676_v1 = vadd.f32 0.5, %v660_v59 }
  0xfe   : > { %v599_v56 = vpop.f32.mrf.mxu1  ;;  %v551_v55 = vadd.f32 %v2664_v52, %v550_v54  ;;  %v2011_v54 = vld [vmem:[%s2589_s6 + $0xe4] sm:$0xf0] }
 0x100   : > { %v600_v57 = vadd.f32 %v599_v56, %v551_v55  ;;  %1158 = vmatmul.bf16.gmra.mxu0 %v1905_v51  ;;  %v2010_v56 = vld [vmem:[%s2589_s6 + $0xe4] sm:$0xf] }
 0x101   : > { %1207 = vmatmul.bf16.gmra.mxu1 %v1909_v53  ;;  %v1928_v53 = vld [vmem:[%s2589_s6 + $0xe0] sm:$0xf]  ;;  %v1933_v59 = vor.u32 %v2010_v56, %v1930_v58 }
 0x102   : > { %v2101_v60 = vpop.eup %2100  ;;  %v630_v62 = vmul.f32 0.5, %v600_v57  ;;  %v1929_v57 = vor.u32 %v2011_v54, %v1928_v53 }
 0x103   : > { %v661_v61 = vmul.f32 0.5, %v2101_v60 }
 0x104   : > { %2102 = vtanh.f32 %v630_v62 }
 0x105   : > { %v552_v63 = vpop.f32.mrf.mxu0  ;;  %v677_v2 = vadd.f32 0.5, %v661_v61 }
 0x106   : > { %v601_v0 = vpop.f32.mrf.mxu1  ;;  %v553_v3 = vadd.f32 %v2664_v52, %v552_v63 }
 0x107   : > { %v690_v4 = vpack.c.bf16 %v677_v2, %v676_v1 }
 0x108   : > { %v602_v5 = vadd.f32 %v601_v0, %v553_v3 }
 0x109   : > { %799 = vmatmul.bf16.gmra.mxu2 %v690_v4  ;;  %848 = vmatmul.bf16.gmra.mxu3 %v690_v4 }
 0x10a   : > { %v631_v10 = vmul.f32 0.5, %v602_v5  ;;  %v2103_v15 = vpop.eup %2102 }
 0x10b   : > { %v662_v18 = vmul.f32 0.5, %v2103_v15  ;;  %v1938_v15 = vld [vmem:[%s2589_s6 + $0xf8] sm:$0xf0] }
 0x10c   : > { %2104 = vtanh.f32 %v631_v10 }
 0x10d   : > { %v555_v13 = vpop.f32.mrf.mxu0  ;;  %v678_v24 = vadd.f32 0.5, %v662_v18 }
 0x10e   : > { %v604_v14 = vpop.f32.mrf.mxu1  ;;  %v556_v16 = vadd.f32 %v2664_v52, %v555_v13  ;;  %v2013_v13 = vld [vmem:[%s2589_s6 + $0xf4] sm:$0xf0] }
 0x110   : > { %v605_v17 = vadd.f32 %v604_v14, %v556_v16  ;;  %1163 = vmatmul.bf16.gmra.mxu0 %v1913_v11  ;;  %v2012_v14 = vld [vmem:[%s2589_s6 + $0xf4] sm:$0xf] }
 0x111   : > { %1212 = vmatmul.bf16.gmra.mxu1 %v1917_v12  ;;  %v1936_v12 = vld [vmem:[%s2589_s6 + $0xf0] sm:$0xf]  ;;  %v1941_v18 = vor.u32 %v2012_v14, %v1938_v15  ;;  %s2387_s6 = sshra.s32 %s1580_s14, 4  ;;  %s2388_s6 = int_to_ptr.hbm [resolvable:$true] %s2387_s6 }
 0x112   : > { %v2105_v19 = vpop.eup %2104  ;;  %v632_v21 = vmul.f32 0.5, %v605_v17  ;;  %v1937_v17 = vor.u32 %v2013_v13, %v1936_v12  ;;  %s2389_s24 = scalar_lea.hbm %s2388_s6, 512  ;;  %p2394_p11 = scmp.lt.s32.totalorder %s2388_s6, %s2909_s5 }
 0x113   : > { %v663_v20 = vmul.f32 0.5, %v2105_v19  ;;  %p2390_p1 = scmp.ne.s32.totalorder %s2388_s6, %s2389_s24  ;;  %p2395_p9 = scmp.lt.s32.totalorder %s2393_s11, %s2389_s24 }
 0x114   : > { %2106 = vtanh.f32 %v632_v21 }
 0x115   : > { %v557_v22 = vpop.f32.mrf.mxu0  ;;  %v679_v25 = vadd.f32 0.5, %v663_v20  ;;  %p2391_p4 = pnand %p2390_p1, %p2555_p5  ;;  %p2396_p2 = por %p2395_p9, %p2394_p11 }
 0x116   : > { %v606_v23 = vpop.f32.mrf.mxu1  ;;  %v558_v26 = vadd.f32 %v2664_v52, %v557_v22 }
 0x117   : > { %v691_v27 = vpack.c.bf16 %v679_v25, %v678_v24  ;;  %p2392_p8 = pneg %p2391_p4 }
 0x118   : > { %v607_v28 = vadd.f32 %v606_v23, %v558_v26 }
 0x119   : > { %804 = vmatmul.bf16.gmra.mxu2 %v691_v27  ;;  %853 = vmatmul.bf16.gmra.mxu3 %v691_v27  ;;  %p2397_p10 = pnand %p2396_p2, %p2392_p8 }
 0x11a   : > { %v633_v33 = vmul.f32 0.5, %v607_v28  ;;  %v2107_v38 = vpop.eup %2106 }
 0x11b   : > { %v664_v41 = vmul.f32 0.5, %v2107_v38 }
 0x11c   : > { %2108 = vtanh.f32 %v633_v33 }
 0x11d   : > { %v560_v36 = vpop.f32.mrf.mxu0  ;;  %v680_v47 = vadd.f32 0.5, %v664_v41 }
 0x11e   : > { %v609_v37 = vpop.f32.mrf.mxu1  ;;  %v561_v39 = vadd.f32 %v2664_v52, %v560_v36 }
 0x120   : > { %v610_v40 = vadd.f32 %v609_v37, %v561_v39  ;;  %1168 = vmatmul.bf16.gmra.mxu0 %v1921_v34 }
 0x121   : > { %1217 = vmatmul.bf16.gmra.mxu1 %v1925_v35 }
 0x122   : > { %v2109_v42 = vpop.eup %2108  ;;  %v634_v44 = vmul.f32 0.5, %v610_v40 }
 0x123   : > { %v665_v43 = vmul.f32 0.5, %v2109_v42 }
 0x124   : > { %2110 = vtanh.f32 %v634_v44 }
 0x125   : > { %v562_v45 = vpop.f32.mrf.mxu0  ;;  %v681_v48 = vadd.f32 0.5, %v665_v43 }
 0x126   : > { %v611_v46 = vpop.f32.mrf.mxu1  ;;  %v563_v49 = vadd.f32 %v2664_v52, %v562_v45 }
 0x127   : > { %v692_v50 = vpack.c.bf16 %v681_v48, %v680_v47 }
 0x128   : > { %v612_v51 = vadd.f32 %v611_v46, %v563_v49 }
 0x129   : > { %809 = vmatmul.bf16.gmra.mxu2 %v692_v50  ;;  %858 = vmatmul.bf16.gmra.mxu3 %v692_v50 }
 0x12a   : > { %v635_v55 = vmul.f32 0.5, %v612_v51  ;;  %v2111_v62 = vpop.eup %2110 }
 0x12b   : > { %v666_v1 = vmul.f32 0.5, %v2111_v62 }
 0x12c   : > { %2112 = vtanh.f32 %v635_v55 }
 0x12d   : > { %v565_v60 = vpop.f32.mrf.mxu0  ;;  %v682_v7 = vadd.f32 0.5, %v666_v1 }
 0x12e   : > { %v614_v61 = vpop.f32.mrf.mxu1  ;;  %v566_v63 = vadd.f32 %v2664_v52, %v565_v60 }
 0x130   : > { %v615_v0 = vadd.f32 %v614_v61, %v566_v63  ;;  %1173 = vmatmul.bf16.gmra.mxu0 %v1929_v57 }
 0x131   : > { %1222 = vmatmul.bf16.gmra.mxu1 %v1933_v59 }
 0x132   : > { %v2113_v2 = vpop.eup %2112  ;;  %v636_v4 = vmul.f32 0.5, %v615_v0 }
 0x133   : > { %v667_v3 = vmul.f32 0.5, %v2113_v2 }
 0x134   : > { %2114 = vtanh.f32 %v636_v4  ;;  %v330_v4 = vld [vmem:[%s2908_s4] sm:$0x3] }
 0x135   : > { %v567_v5 = vpop.f32.mrf.mxu0  ;;  %v683_v8 = vadd.f32 0.5, %v667_v3 }
 0x136   : > { %v616_v6 = vpop.f32.mrf.mxu1  ;;  %v568_v9 = vadd.f32 %v2664_v52, %v567_v5 }
 0x137   : > { %v693_v10 = vpack.c.bf16 %v683_v8, %v682_v7  ;;  %v2723_v7 = vperm.slane %v330_v4, 0  ;;  %v2725_v8 = vperm.slane %v330_v4, 1 }
 0x138   : > { %v617_v11 = vadd.f32 %v616_v6, %v568_v9 }
 0x139   : > { %814 = vmatmul.bf16.gmra.mxu2 %v693_v10  ;;  %863 = vmatmul.bf16.gmra.mxu3 %v693_v10 }
 0x13a   : > { %v637_v16 = vmul.f32 0.5, %v617_v11  ;;  %v2115_v21 = vpop.eup %2114 }
 0x13b   : > { %v668_v24 = vmul.f32 0.5, %v2115_v21 }
 0x13c   : > { %2116 = vtanh.f32 %v637_v16 }
 0x13d   : > { %v570_v19 = vpop.f32.mrf.mxu0  ;;  %v684_v30 = vadd.f32 0.5, %v668_v24 }
 0x13e   : > { %v619_v20 = vpop.f32.mrf.mxu1  ;;  %v571_v22 = vadd.f32 %v2664_v52, %v570_v19 }
 0x140   : > { %v620_v23 = vadd.f32 %v619_v20, %v571_v22  ;;  %1178 = vmatmul.bf16.gmra.mxu0 %v1937_v17 }
 0x141   : > { %1227 = vmatmul.bf16.gmra.mxu1 %v1941_v18 }
 0x142   : > { %v2117_v25 = vpop.eup %2116  ;;  %v638_v27 = vmul.f32 0.5, %v620_v23 }
 0x143   : > { %v669_v26 = vmul.f32 0.5, %v2117_v25 }
 0x144   : > { %2118 = vtanh.f32 %v638_v27 }
 0x145   : > { %v572_v28 = vpop.f32.mrf.mxu0  ;;  %v685_v31 = vadd.f32 0.5, %v669_v26 }
 0x146   : > { %v621_v29 = vpop.f32.mrf.mxu1  ;;  %v573_v32 = vadd.f32 %v2664_v52, %v572_v28 }
 0x147   : > { %v694_v33 = vpack.c.bf16 %v685_v31, %v684_v30 }
 0x148   : > { %v622_v34 = vadd.f32 %v621_v29, %v573_v32 }
 0x149   : > { %819 = vmatmul.bf16.gmra.mxu2 %v694_v33  ;;  %868 = vmatmul.bf16.gmra.mxu3 %v694_v33 }
 0x14a   : > { %v639_v35 = vmul.f32 0.5, %v622_v34  ;;  %v2119_v38 = vpop.eup %2118 }
 0x14b   : > { %v670_v41 = vmul.f32 0.5, %v2119_v38 }
 0x14c   : > { %2120 = vtanh.f32 %v639_v35 }
 0x14d   : > { %v1144_v36 = vpop.f32.mrf.mxu0  ;;  %v686_v47 = vadd.f32 0.5, %v670_v41 }
 0x14e   : > { %v1193_v37 = vpop.f32.mrf.mxu1  ;;  %v1145_v39 = vadd.f32 %v2664_v52, %v1144_v36 }
 0x150   : > { %v1194_v40 = vadd.f32 %v1193_v37, %v1145_v39 }
 0x152   : > { %v2121_v42 = vpop.eup %2120  ;;  %v1233_v44 = vmul.f32 0.5, %v1194_v40 }
 0x153   : > { %v671_v43 = vmul.f32 0.5, %v2121_v42 }
 0x154   : > { %2122 = vtanh.f32 %v1233_v44 }
 0x155   : > { %v1146_v45 = vpop.f32.mrf.mxu0  ;;  %v687_v48 = vadd.f32 0.5, %v671_v43 }
 0x156   : > { %v1195_v46 = vpop.f32.mrf.mxu1  ;;  %v1147_v49 = vadd.f32 %v2664_v52, %v1146_v45 }
 0x157   : > { %v695_v50 = vpack.c.bf16 %v687_v48, %v686_v47 }
 0x158   : > { %v1196_v51 = vadd.f32 %v1195_v46, %v1147_v49 }
 0x159   : > { %824 = vmatmul.bf16.gmra.mxu2 %v695_v50  ;;  %873 = vmatmul.bf16.gmra.mxu3 %v695_v50 }
 0x15a   : > { %v1234_v53 = vmul.f32 0.5, %v1196_v51  ;;  %v2123_v58 = vpop.eup %2122 }
 0x15b   : > { %v1265_v59 = vmul.f32 0.5, %v2123_v58 }
 0x15c   : > { %2124 = vtanh.f32 %v1234_v53 }
 0x15d   : > { %v1149_v54 = vpop.f32.mrf.mxu0  ;;  %v1281_v63 = vadd.f32 0.5, %v1265_v59 }
 0x15e   : > { %v1198_v56 = vpop.f32.mrf.mxu1  ;;  %v1150_v55 = vadd.f32 %v2664_v52, %v1149_v54 }
 0x160   : > { %v1199_v57 = vadd.f32 %v1198_v56, %v1150_v55 }
 0x162   : > { %v2125_v60 = vpop.eup %2124  ;;  %v1235_v62 = vmul.f32 0.5, %v1199_v57 }
 0x163   : > { %v1266_v61 = vmul.f32 0.5, %v2125_v60 }
 0x164   : > { %2126 = vtanh.f32 %v1235_v62 }
 0x165   : > { %v1282_v0 = vadd.f32 0.5, %v1266_v61  ;;  %v1151_v1 = vpop.f32.mrf.mxu0 }
 0x166   : > { %v1200_v2 = vpop.f32.mrf.mxu1  ;;  %v1152_v3 = vadd.f32 %v2664_v52, %v1151_v1 }
 0x167   : > { %v1297_v5 = vpack.c.bf16 %v1282_v0, %v1281_v63 }
 0x168   : > { %v1201_v6 = vadd.f32 %v1200_v2, %v1152_v3 }
 0x169   : > { %1313 = vmatmul.bf16.vlgmr.msrb.gmra.mxu2 %v1297_v5  ;;  %1362 = vmatmul.bf16.vlgmr.msrb.gmra.mxu3 %v1297_v5 }
 0x16a   : > { %v1236_v9 = vmul.f32 0.5, %v1201_v6  ;;  %v2127_v16 = vpop.eup %2126 }
 0x16b   : > { %v1267_v21 = vmul.f32 0.5, %v2127_v16 }
 0x16c   : > { %2128 = vtanh.f32 %v1236_v9  ;;  %v790_v10 = vpop.f32.mrf.mxu2  ;;  %v839_v11 = vpop.f32.mrf.mxu3 }
 0x16d   : > { %v791_v12 = vadd.f32 %v790_v10, %v2723_v7  ;;  %v840_v13 = vadd.f32 %v839_v11, %v2725_v8  ;;  %v1154_v14 = vpop.f32.mrf.mxu0  ;;  %v1283_v31 = vadd.f32 0.5, %v1267_v21 }
 0x16e   : > { %v1203_v15 = vpop.f32.mrf.mxu1  ;;  %v1155_v17 = vadd.f32 %v2664_v52, %v1154_v14 }
 0x16f   : > { %v879_v18 = vmul.f32 0.5, %v791_v12  ;;  %v880_v19 = vmul.f32 0.5, %v840_v13 }
 0x170   : > { %v1204_v20 = vadd.f32 %v1203_v15, %v1155_v17 }
 0x171   : > { %2130 = vtanh.f32 %v879_v18 }
 0x172   : > { %v2129_v22 = vpop.eup %2128  ;;  %2132 = vtanh.f32 %v880_v19  ;;  %v1237_v24 = vmul.f32 0.5, %v1204_v20 }
 0x173   : > { %v1268_v23 = vmul.f32 0.5, %v2129_v22 }
 0x174   : > { %v792_v25 = vpop.f32.mrf.mxu2  ;;  %v841_v26 = vpop.f32.mrf.mxu3  ;;  %2134 = vtanh.f32 %v1237_v24 }
 0x175   : > { %v793_v27 = vadd.f32 %v792_v25, %v2723_v7  ;;  %v842_v28 = vadd.f32 %v841_v26, %v2725_v8  ;;  %v1156_v29 = vpop.f32.mrf.mxu0  ;;  %v1284_v32 = vadd.f32 0.5, %v1268_v23 }
 0x176   : > { %v1205_v30 = vpop.f32.mrf.mxu1  ;;  %v1157_v33 = vadd.f32 %v2664_v52, %v1156_v29 }
 0x177   : > { %v2131_v34 = vpop.eup %2130  ;;  %v881_v35 = vmul.f32 0.5, %v793_v27  ;;  %v882_v36 = vmul.f32 0.5, %v842_v28  ;;  %v1298_v37 = vpack.c.bf16 %v1284_v32, %v1283_v31 }
 0x178   : > { %v2133_v38 = vpop.eup %2132  ;;  %v943_v39 = vmul.f32 0.5, %v2131_v34  ;;  %v1206_v40 = vadd.f32 %v1205_v30, %v1157_v33 }
 0x179   : > { %v944_v41 = vmul.f32 0.5, %v2133_v38  ;;  %2136 = vtanh.f32 %v881_v35  ;;  %1318 = vmatmul.bf16.gmra.mxu2 %v1298_v37  ;;  %1367 = vmatmul.bf16.gmra.mxu3 %v1298_v37 }
 0x17a   : > { %v975_v42 = vadd.f32 0.5, %v943_v39  ;;  %2138 = vtanh.f32 %v882_v36  ;;  %v1238_v43 = vmul.f32 0.5, %v1206_v40  ;;  %v2135_v51 = vpop.eup %2134 }
 0x17b   : > { %v976_v44 = vadd.f32 0.5, %v944_v41  ;;  %v1269_v60 = vmul.f32 0.5, %v2135_v51 }
 0x17c   : > { %1007 = vst [vmem:[%s2734_s13] sm:$0xff] %v975_v42  ;;  %2140 = vtanh.f32 %v1238_v43  ;;  %v795_v45 = vpop.f32.mrf.mxu2  ;;  %v844_v46 = vpop.f32.mrf.mxu3 }
 0x17d   : > { %1008 = vst [vmem:[%s2734_s13 + $0x8] sm:$0xff] %v976_v44  ;;  %v796_v47 = vadd.f32 %v795_v45, %v2723_v7  ;;  %v845_v48 = vadd.f32 %v844_v46, %v2725_v8  ;;  %v1159_v49 = vpop.f32.mrf.mxu0  ;;  %v1285_v11 = vadd.f32 0.5, %v1269_v60 }
 0x17e   : > { %v1208_v50 = vpop.f32.mrf.mxu1  ;;  %v1160_v53 = vadd.f32 %v2664_v52, %v1159_v49 }
 0x17f   : > { %v2137_v54 = vpop.eup %2136  ;;  %v883_v56 = vmul.f32 0.5, %v796_v47  ;;  %v884_v58 = vmul.f32 0.5, %v845_v48 }
 0x180   : > { %v2139_v55 = vpop.eup %2138  ;;  %v945_v57 = vmul.f32 0.5, %v2137_v54  ;;  %v1209_v59 = vadd.f32 %v1208_v50, %v1160_v53 }
 0x181   : > { %v946_v61 = vmul.f32 0.5, %v2139_v55  ;;  %2142 = vtanh.f32 %v883_v56 }
 0x182   : > { %v2141_v62 = vpop.eup %2140  ;;  %v977_v63 = vadd.f32 0.5, %v945_v57  ;;  %2144 = vtanh.f32 %v884_v58  ;;  %v1239_v2 = vmul.f32 0.5, %v1209_v59 }
 0x183   : > { %v978_v0 = vadd.f32 0.5, %v946_v61  ;;  %v1270_v1 = vmul.f32 0.5, %v2141_v62 }
 0x184   : > { %1009 = vst [vmem:[%s2734_s13 + $0x10] sm:$0xff] %v977_v63  ;;  %v797_v3 = vpop.f32.mrf.mxu2  ;;  %v846_v4 = vpop.f32.mrf.mxu3  ;;  %2146 = vtanh.f32 %v1239_v2 }
 0x185   : > { %1010 = vst [vmem:[%s2734_s13 + $0x18] sm:$0xff] %v978_v0  ;;  %v798_v5 = vadd.f32 %v797_v3, %v2723_v7  ;;  %v847_v6 = vadd.f32 %v846_v4, %v2725_v8  ;;  %v1161_v9 = vpop.f32.mrf.mxu0  ;;  %v1286_v12 = vadd.f32 0.5, %v1270_v1 }
 0x186   : > { %v1210_v10 = vpop.f32.mrf.mxu1  ;;  %v1162_v13 = vadd.f32 %v2664_v52, %v1161_v9 }
 0x187   : > { %v2143_v14 = vpop.eup %2142  ;;  %v885_v15 = vmul.f32 0.5, %v798_v5  ;;  %v886_v16 = vmul.f32 0.5, %v847_v6  ;;  %v1299_v17 = vpack.c.bf16 %v1286_v12, %v1285_v11 }
 0x188   : > { %v2145_v18 = vpop.eup %2144  ;;  %v947_v19 = vmul.f32 0.5, %v2143_v14  ;;  %v1211_v20 = vadd.f32 %v1210_v10, %v1162_v13 }
 0x189   : > { %v948_v21 = vmul.f32 0.5, %v2145_v18  ;;  %2148 = vtanh.f32 %v885_v15  ;;  %1323 = vmatmul.bf16.gmra.mxu2 %v1299_v17  ;;  %1372 = vmatmul.bf16.gmra.mxu3 %v1299_v17 }
 0x18a   : > { %v979_v22 = vadd.f32 0.5, %v947_v19  ;;  %2150 = vtanh.f32 %v886_v16  ;;  %v1240_v23 = vmul.f32 0.5, %v1211_v20  ;;  %v2147_v31 = vpop.eup %2146 }
 0x18b   : > { %v980_v24 = vadd.f32 0.5, %v948_v21  ;;  %v1271_v39 = vmul.f32 0.5, %v2147_v31 }
 0x18c   : > { %1011 = vst [vmem:[%s2734_s13 + $0x20] sm:$0xff] %v979_v22  ;;  %2152 = vtanh.f32 %v1240_v23  ;;  %v800_v25 = vpop.f32.mrf.mxu2  ;;  %v849_v26 = vpop.f32.mrf.mxu3 }
 0x18d   : > { %1012 = vst [vmem:[%s2734_s13 + $0x28] sm:$0xff] %v980_v24  ;;  %v801_v27 = vadd.f32 %v800_v25, %v2723_v7  ;;  %v850_v28 = vadd.f32 %v849_v26, %v2725_v8  ;;  %v1164_v29 = vpop.f32.mrf.mxu0  ;;  %v1287_v53 = vadd.f32 0.5, %v1271_v39 }
 0x18e   : > { %v1213_v30 = vpop.f32.mrf.mxu1  ;;  %v1165_v32 = vadd.f32 %v2664_v52, %v1164_v29 }
 0x18f   : > { %v2149_v33 = vpop.eup %2148  ;;  %v887_v34 = vmul.f32 0.5, %v801_v27  ;;  %v888_v35 = vmul.f32 0.5, %v850_v28 }
 0x190   : > { %v2151_v36 = vpop.eup %2150  ;;  %v949_v37 = vmul.f32 0.5, %v2149_v33  ;;  %v1214_v38 = vadd.f32 %v1213_v30, %v1165_v32 }
 0x191   : > { %v950_v40 = vmul.f32 0.5, %v2151_v36  ;;  %2154 = vtanh.f32 %v887_v34 }
 0x192   : > { %v2153_v41 = vpop.eup %2152  ;;  %v981_v42 = vadd.f32 0.5, %v949_v37  ;;  %2156 = vtanh.f32 %v888_v35  ;;  %v1241_v45 = vmul.f32 0.5, %v1214_v38 }
 0x193   : > { %v982_v43 = vadd.f32 0.5, %v950_v40  ;;  %v1272_v44 = vmul.f32 0.5, %v2153_v41 }
 0x194   : > { %1013 = vst [vmem:[%s2734_s13 + $0x30] sm:$0xff] %v981_v42  ;;  %v802_v46 = vpop.f32.mrf.mxu2  ;;  %v851_v47 = vpop.f32.mrf.mxu3  ;;  %2158 = vtanh.f32 %v1241_v45 }
 0x195   : > { %1014 = vst [vmem:[%s2734_s13 + $0x38] sm:$0xff] %v982_v43  ;;  %v803_v48 = vadd.f32 %v802_v46, %v2723_v7  ;;  %v852_v49 = vadd.f32 %v851_v47, %v2725_v8  ;;  %v1166_v50 = vpop.f32.mrf.mxu0  ;;  %v1288_v54 = vadd.f32 0.5, %v1272_v44 }
 0x196   : > { %v1215_v51 = vpop.f32.mrf.mxu1  ;;  %v1167_v56 = vadd.f32 %v2664_v52, %v1166_v50 }
 0x197   : > { %v2155_v58 = vpop.eup %2154  ;;  %v889_v55 = vmul.f32 0.5, %v803_v48  ;;  %v890_v57 = vmul.f32 0.5, %v852_v49  ;;  %v1300_v59 = vpack.c.bf16 %v1288_v54, %v1287_v53 }
 0x198   : > { %v2157_v60 = vpop.eup %2156  ;;  %v951_v61 = vmul.f32 0.5, %v2155_v58  ;;  %v1216_v62 = vadd.f32 %v1215_v51, %v1167_v56 }
 0x199   : > { %v952_v63 = vmul.f32 0.5, %v2157_v60  ;;  %2160 = vtanh.f32 %v889_v55  ;;  %1328 = vmatmul.bf16.gmra.mxu2 %v1300_v59  ;;  %1377 = vmatmul.bf16.gmra.mxu3 %v1300_v59 }
 0x19a   : > { %v983_v0 = vadd.f32 0.5, %v951_v61  ;;  %2162 = vtanh.f32 %v890_v57  ;;  %v1242_v1 = vmul.f32 0.5, %v1216_v62  ;;  %v2159_v11 = vpop.eup %2158 }
 0x19b   : > { %v984_v2 = vadd.f32 0.5, %v952_v63  ;;  %v1273_v19 = vmul.f32 0.5, %v2159_v11 }
 0x19c   : > { %1015 = vst [vmem:[%s2734_s13 + $0x40] sm:$0xff] %v983_v0  ;;  %2164 = vtanh.f32 %v1242_v1  ;;  %v805_v3 = vpop.f32.mrf.mxu2  ;;  %v854_v4 = vpop.f32.mrf.mxu3 }
 0x19d   : > { %1016 = vst [vmem:[%s2734_s13 + $0x48] sm:$0xff] %v984_v2  ;;  %v806_v5 = vadd.f32 %v805_v3, %v2723_v7  ;;  %v855_v6 = vadd.f32 %v854_v4, %v2725_v8  ;;  %v1169_v9 = vpop.f32.mrf.mxu0  ;;  %v1289_v28 = vadd.f32 0.5, %v1273_v19 }
 0x19e   : > { %v1218_v10 = vpop.f32.mrf.mxu1  ;;  %v1170_v12 = vadd.f32 %v2664_v52, %v1169_v9 }
 0x19f   : > { %v2161_v13 = vpop.eup %2160  ;;  %v891_v14 = vmul.f32 0.5, %v806_v5  ;;  %v892_v15 = vmul.f32 0.5, %v855_v6 }
 0x1a0   : > { %v2163_v16 = vpop.eup %2162  ;;  %v953_v17 = vmul.f32 0.5, %v2161_v13  ;;  %v1219_v18 = vadd.f32 %v1218_v10, %v1170_v12  ;;  %v2282_v13 = vld [vmem:[%s2906_s2] ss:$0 sm:$0xff] }
 0x1a1   : > { %v954_v20 = vmul.f32 0.5, %v2163_v16  ;;  %2166 = vtanh.f32 %v891_v14 }
 0x1a2   : > { %v2165_v21 = vpop.eup %2164  ;;  %v985_v22 = vadd.f32 0.5, %v953_v17  ;;  %2168 = vtanh.f32 %v892_v15  ;;  %v1243_v25 = vmul.f32 0.5, %v1219_v18 }
 0x1a3   : > { %v986_v23 = vadd.f32 0.5, %v954_v20  ;;  %v1274_v24 = vmul.f32 0.5, %v2165_v21 }
 0x1a4   : > { %1017 = vst [vmem:[%s2734_s13 + $0x50] sm:$0xff] %v985_v22  ;;  %v807_v26 = vpop.f32.mrf.mxu2  ;;  %v856_v27 = vpop.f32.mrf.mxu3  ;;  %2170 = vtanh.f32 %v1243_v25 }
 0x1a5   : > { %1018 = vst [vmem:[%s2734_s13 + $0x58] sm:$0xff] %v986_v23  ;;  %v1290_v29 = vadd.f32 0.5, %v1274_v24  ;;  %v808_v30 = vadd.f32 %v807_v26, %v2723_v7  ;;  %v857_v31 = vadd.f32 %v856_v27, %v2725_v8  ;;  %v1171_v32 = vpop.f32.mrf.mxu0 }
 0x1a6   : > { %v1220_v33 = vpop.f32.mrf.mxu1  ;;  %v1172_v34 = vadd.f32 %v2664_v52, %v1171_v32 }
 0x1a7   : > { %v2167_v35 = vpop.eup %2166  ;;  %v893_v36 = vmul.f32 0.5, %v808_v30  ;;  %v894_v37 = vmul.f32 0.5, %v857_v31  ;;  %v1301_v38 = vpack.c.bf16 %v1290_v29, %v1289_v28 }
 0x1a8   : > { %v2169_v39 = vpop.eup %2168  ;;  %v955_v40 = vmul.f32 0.5, %v2167_v35  ;;  %v1221_v41 = vadd.f32 %v1220_v33, %v1172_v34 }
 0x1a9   : > { %v956_v42 = vmul.f32 0.5, %v2169_v39  ;;  %2172 = vtanh.f32 %v893_v36  ;;  %1333 = vmatmul.bf16.gmra.mxu2 %v1301_v38  ;;  %1382 = vmatmul.bf16.gmra.mxu3 %v1301_v38 }
 0x1aa   : > { %v987_v43 = vadd.f32 0.5, %v955_v40  ;;  %2174 = vtanh.f32 %v894_v37  ;;  %v1244_v44 = vmul.f32 0.5, %v1221_v41  ;;  %v2171_v53 = vpop.eup %2170 }
 0x1ab   : > { %v988_v45 = vadd.f32 0.5, %v956_v42  ;;  %v1275_v61 = vmul.f32 0.5, %v2171_v53 }
 0x1ac   : > { %1019 = vst [vmem:[%s2734_s13 + $0x60] sm:$0xff] %v987_v43  ;;  %2176 = vtanh.f32 %v1244_v44  ;;  %v810_v46 = vpop.f32.mrf.mxu2  ;;  %v859_v47 = vpop.f32.mrf.mxu3 }
 0x1ad   : > { %1020 = vst [vmem:[%s2734_s13 + $0x68] sm:$0xff] %v988_v45  ;;  %v811_v48 = vadd.f32 %v810_v46, %v2723_v7  ;;  %v860_v49 = vadd.f32 %v859_v47, %v2725_v8  ;;  %v1174_v50 = vpop.f32.mrf.mxu0 }
 0x1ae   : > { %v1223_v51 = vpop.f32.mrf.mxu1  ;;  %v1175_v54 = vadd.f32 %v2664_v52, %v1174_v50  ;;  %v1291_v52 = vadd.f32 0.5, %v1275_v61 }
 0x1af   : > { %v2173_v56 = vpop.eup %2172  ;;  %v895_v58 = vmul.f32 0.5, %v811_v48  ;;  %v896_v55 = vmul.f32 0.5, %v860_v49 }
 0x1b0   : > { %v2175_v57 = vpop.eup %2174  ;;  %v957_v59 = vmul.f32 0.5, %v2173_v56  ;;  %v1224_v60 = vadd.f32 %v1223_v51, %v1175_v54 }
 0x1b1   : > { %v958_v62 = vmul.f32 0.5, %v2175_v57  ;;  %2178 = vtanh.f32 %v895_v58 }
 0x1b2   : > { %v2177_v63 = vpop.eup %2176  ;;  %v989_v0 = vadd.f32 0.5, %v957_v59  ;;  %2180 = vtanh.f32 %v896_v55  ;;  %v1245_v3 = vmul.f32 0.5, %v1224_v60 }
 0x1b3   : > { %v990_v1 = vadd.f32 0.5, %v958_v62  ;;  %v1276_v2 = vmul.f32 0.5, %v2177_v63 }
 0x1b4   : > { %1021 = vst [vmem:[%s2734_s13 + $0x70] sm:$0xff] %v989_v0  ;;  %v812_v4 = vpop.f32.mrf.mxu2  ;;  %v861_v5 = vpop.f32.mrf.mxu3  ;;  %2182 = vtanh.f32 %v1245_v3 }
 0x1b5   : > { %1022 = vst [vmem:[%s2734_s13 + $0x78] sm:$0xff] %v990_v1  ;;  %v1292_v6 = vadd.f32 0.5, %v1276_v2  ;;  %v813_v9 = vadd.f32 %v812_v4, %v2723_v7  ;;  %v862_v10 = vadd.f32 %v861_v5, %v2725_v8  ;;  %v1176_v11 = vpop.f32.mrf.mxu0 }
 0x1b6   : > { %v1225_v12 = vpop.f32.mrf.mxu1  ;;  %v1177_v14 = vadd.f32 %v2282_v13, %v1176_v11 }
 0x1b7   : > { %v2179_v15 = vpop.eup %2178  ;;  %v897_v16 = vmul.f32 0.5, %v813_v9  ;;  %v898_v17 = vmul.f32 0.5, %v862_v10  ;;  %v1302_v18 = vpack.c.bf16 %v1292_v6, %v1291_v52 }
 0x1b8   : > { %v2181_v19 = vpop.eup %2180  ;;  %v959_v20 = vmul.f32 0.5, %v2179_v15  ;;  %v1226_v21 = vadd.f32 %v1225_v12, %v1177_v14 }
 0x1b9   : > { %v960_v22 = vmul.f32 0.5, %v2181_v19  ;;  %2184 = vtanh.f32 %v897_v16  ;;  %1338 = vmatmul.bf16.gmra.mxu2 %v1302_v18  ;;  %1387 = vmatmul.bf16.gmra.mxu3 %v1302_v18 }
 0x1ba   : > { %v991_v23 = vadd.f32 0.5, %v959_v20  ;;  %2186 = vtanh.f32 %v898_v17  ;;  %v1246_v24 = vmul.f32 0.5, %v1226_v21  ;;  %v2183_v32 = vpop.eup %2182 }
 0x1bb   : > { %v992_v25 = vadd.f32 0.5, %v960_v22  ;;  %v1277_v40 = vmul.f32 0.5, %v2183_v32 }
 0x1bc   : > { %1023 = vst [vmem:[%s2734_s13 + $0x80] sm:$0xff] %v991_v23  ;;  %2188 = vtanh.f32 %v1246_v24  ;;  %v815_v26 = vpop.f32.mrf.mxu2  ;;  %v864_v27 = vpop.f32.mrf.mxu3 }
 0x1bd   : > { %1024 = vst [vmem:[%s2734_s13 + $0x88] sm:$0xff] %v992_v25  ;;  %v816_v28 = vadd.f32 %v815_v26, %v2723_v7  ;;  %v865_v29 = vadd.f32 %v864_v27, %v2725_v8  ;;  %v1179_v30 = vpop.f32.mrf.mxu0  ;;  %v1293_v49 = vadd.f32 0.5, %v1277_v40 }
 0x1be   : > { %v1228_v31 = vpop.f32.mrf.mxu1  ;;  %v1180_v33 = vadd.f32 %v2282_v13, %v1179_v30 }
 0x1bf   : > { %v2185_v34 = vpop.eup %2184  ;;  %v899_v35 = vmul.f32 0.5, %v816_v28  ;;  %v900_v36 = vmul.f32 0.5, %v865_v29 }
 0x1c0   : > { %v2187_v37 = vpop.eup %2186  ;;  %v961_v38 = vmul.f32 0.5, %v2185_v34  ;;  %v1229_v39 = vadd.f32 %v1228_v31, %v1180_v33 }
 0x1c1   : > { %v962_v41 = vmul.f32 0.5, %v2187_v37  ;;  %2190 = vtanh.f32 %v899_v35 }
 0x1c2   : > { %v2189_v42 = vpop.eup %2188  ;;  %v993_v43 = vadd.f32 0.5, %v961_v38  ;;  %2192 = vtanh.f32 %v900_v36  ;;  %v1247_v46 = vmul.f32 0.5, %v1229_v39 }
 0x1c3   : > { %v994_v44 = vadd.f32 0.5, %v962_v41  ;;  %v1278_v45 = vmul.f32 0.5, %v2189_v42 }
 0x1c4   : > { %1025 = vst [vmem:[%s2734_s13 + $0x90] sm:$0xff] %v993_v43  ;;  %v817_v47 = vpop.f32.mrf.mxu2  ;;  %v866_v48 = vpop.f32.mrf.mxu3  ;;  %2194 = vtanh.f32 %v1247_v46 }
 0x1c5   : > { %1026 = vst [vmem:[%s2734_s13 + $0x98] sm:$0xff] %v994_v44  ;;  %v1294_v50 = vadd.f32 0.5, %v1278_v45  ;;  %v818_v51 = vadd.f32 %v817_v47, %v2723_v7  ;;  %v867_v53 = vadd.f32 %v866_v48, %v2725_v8  ;;  %v1181_v54 = vpop.f32.mrf.mxu0 }
 0x1c6   : > { %v1182_v56 = vadd.f32 %v2282_v13, %v1181_v54  ;;  %v1230_v59 = vpop.f32.mrf.mxu1 }
 0x1c7   : > { %v2191_v58 = vpop.eup %2190  ;;  %v901_v55 = vmul.f32 0.5, %v818_v51  ;;  %v902_v57 = vmul.f32 0.5, %v867_v53  ;;  %v1303_v60 = vpack.c.bf16 %v1294_v50, %v1293_v49 }
 0x1c8   : > { %v2193_v61 = vpop.eup %2192  ;;  %v963_v62 = vmul.f32 0.5, %v2191_v58  ;;  %v1231_v63 = vadd.f32 %v1230_v59, %v1182_v56 }
 0x1c9   : > { %v964_v0 = vmul.f32 0.5, %v2193_v61  ;;  %2196 = vtanh.f32 %v901_v55  ;;  %1343 = vmatmul.bf16.gmra.mxu2 %v1303_v60  ;;  %1392 = vmatmul.bf16.gmra.mxu3 %v1303_v60 }
 0x1ca   : > { %v995_v1 = vadd.f32 0.5, %v963_v62  ;;  %2198 = vtanh.f32 %v902_v57  ;;  %v1248_v2 = vmul.f32 0.5, %v1231_v63  ;;  %v2195_v9 = vpop.eup %2194 }
 0x1cb   : > { %v996_v3 = vadd.f32 0.5, %v964_v0  ;;  %v1279_v15 = vmul.f32 0.5, %v2195_v9 }
 0x1cc   : > { %1027 = vst [vmem:[%s2734_s13 + $0xa0] sm:$0xff] %v995_v1  ;;  %2200 = vtanh.f32 %v1248_v2  ;;  %v820_v4 = vpop.f32.mrf.mxu2  ;;  %v869_v5 = vpop.f32.mrf.mxu3 }
 0x1cd   : > { %1028 = vst [vmem:[%s2734_s13 + $0xa8] sm:$0xff] %v996_v3  ;;  %v821_v52 = vadd.f32 %v820_v4, %v2723_v7  ;;  %v870_v6 = vadd.f32 %v869_v5, %v2725_v8  ;;  %v1295_v23 = vadd.f32 0.5, %v1279_v15 }
 0x1cf   : > { %v2197_v10 = vpop.eup %2196  ;;  %v903_v11 = vmul.f32 0.5, %v821_v52  ;;  %v904_v12 = vmul.f32 0.5, %v870_v6 }
 0x1d0   : > { %v2199_v13 = vpop.eup %2198  ;;  %v965_v14 = vmul.f32 0.5, %v2197_v10 }
 0x1d1   : > { %v966_v16 = vmul.f32 0.5, %v2199_v13  ;;  %2202 = vtanh.f32 %v903_v11 }
 0x1d2   : > { %v2201_v17 = vpop.eup %2200  ;;  %v997_v18 = vadd.f32 0.5, %v965_v14  ;;  %2204 = vtanh.f32 %v904_v12 }
 0x1d3   : > { %v998_v19 = vadd.f32 0.5, %v966_v16  ;;  %v1280_v20 = vmul.f32 0.5, %v2201_v17 }
 0x1d4   : > { %1029 = vst [vmem:[%s2734_s13 + $0xb0] sm:$0xff] %v997_v18  ;;  %v822_v21 = vpop.f32.mrf.mxu2  ;;  %v871_v22 = vpop.f32.mrf.mxu3 }
 0x1d5   : > { %1030 = vst [vmem:[%s2734_s13 + $0xb8] sm:$0xff] %v998_v19  ;;  %v1296_v24 = vadd.f32 0.5, %v1280_v20  ;;  %v823_v25 = vadd.f32 %v822_v21, %v2723_v7  ;;  %v872_v26 = vadd.f32 %v871_v22, %v2725_v8 }
 0x1d7   : > { %v2203_v27 = vpop.eup %2202  ;;  %v905_v28 = vmul.f32 0.5, %v823_v25  ;;  %v906_v29 = vmul.f32 0.5, %v872_v26  ;;  %v1304_v30 = vpack.c.bf16 %v1296_v24, %v1295_v23 }
 0x1d8   : > { %v2205_v31 = vpop.eup %2204  ;;  %v967_v32 = vmul.f32 0.5, %v2203_v27 }
 0x1d9   : > { %v968_v33 = vmul.f32 0.5, %v2205_v31  ;;  %2206 = vtanh.f32 %v905_v28  ;;  %1348 = vmatmul.bf16.gmra.mxu2 %v1304_v30  ;;  %1397 = vmatmul.bf16.gmra.mxu3 %v1304_v30 }
 0x1da   : > { %v999_v34 = vadd.f32 0.5, %v967_v32  ;;  %2208 = vtanh.f32 %v906_v29 }
 0x1db   : > { %v1000_v35 = vadd.f32 0.5, %v968_v33 }
 0x1dc   : > { %1031 = vst [vmem:[%s2734_s13 + $0xc0] sm:$0xff] %v999_v34  ;;  %v825_v36 = vpop.f32.mrf.mxu2  ;;  %v874_v37 = vpop.f32.mrf.mxu3 }
 0x1dd   : > { %1032 = vst [vmem:[%s2734_s13 + $0xc8] sm:$0xff] %v1000_v35  ;;  %v826_v38 = vadd.f32 %v825_v36, %v2723_v7  ;;  %v875_v39 = vadd.f32 %v874_v37, %v2725_v8 }
 0x1df   : > { %v2207_v40 = vpop.eup %2206  ;;  %v907_v41 = vmul.f32 0.5, %v826_v38  ;;  %v908_v42 = vmul.f32 0.5, %v875_v39 }
 0x1e0   : > { %v2209_v43 = vpop.eup %2208  ;;  %v969_v44 = vmul.f32 0.5, %v2207_v40 }
 0x1e1   : > { %v970_v45 = vmul.f32 0.5, %v2209_v43  ;;  %2210 = vtanh.f32 %v907_v41 }
 0x1e2   : > { %v1001_v46 = vadd.f32 0.5, %v969_v44  ;;  %2212 = vtanh.f32 %v908_v42 }
 0x1e3   : > { %v1002_v47 = vadd.f32 0.5, %v970_v45 }
 0x1e4   : > { %1033 = vst [vmem:[%s2734_s13 + $0xd0] sm:$0xff] %v1001_v46  ;;  %v827_v48 = vpop.f32.mrf.mxu2  ;;  %v876_v49 = vpop.f32.mrf.mxu3 }
 0x1e5   : > { %1034 = vst [vmem:[%s2734_s13 + $0xd8] sm:$0xff] %v1002_v47  ;;  %v828_v50 = vadd.f32 %v827_v48, %v2723_v7  ;;  %v877_v51 = vadd.f32 %v876_v49, %v2725_v8 }
 0x1e7   : > { %v2211_v53 = vpop.eup %2210  ;;  %v909_v54 = vmul.f32 0.5, %v828_v50  ;;  %v910_v56 = vmul.f32 0.5, %v877_v51 }
 0x1e8   : > { %v2213_v58 = vpop.eup %2212  ;;  %v971_v55 = vmul.f32 0.5, %v2211_v53 }
 0x1e9   : > { %v972_v57 = vmul.f32 0.5, %v2213_v58  ;;  %2214 = vtanh.f32 %v909_v54 }
 0x1ea   : > { %v1003_v59 = vadd.f32 0.5, %v971_v55  ;;  %2216 = vtanh.f32 %v910_v56 }
 0x1eb   : > { %v1004_v60 = vadd.f32 0.5, %v972_v57 }
 0x1ec   : > { %1035 = vst [vmem:[%s2734_s13 + $0xe0] sm:$0xff] %v1003_v59  ;;  %v1314_v61 = vpop.f32.mrf.mxu2  ;;  %v1363_v62 = vpop.f32.mrf.mxu3 }
 0x1ed   : > { %1036 = vst [vmem:[%s2734_s13 + $0xe8] sm:$0xff] %v1004_v60  ;;  %v1315_v63 = vadd.f32 %v1314_v61, %v2723_v7  ;;  %v1364_v0 = vadd.f32 %v1363_v62, %v2725_v8 }
 0x1ef   : > { %v2215_v1 = vpop.eup %2214  ;;  %v1403_v2 = vmul.f32 0.5, %v1315_v63  ;;  %v1404_v3 = vmul.f32 0.5, %v1364_v0 }
 0x1f0   : > { %v2217_v4 = vpop.eup %2216  ;;  %v973_v5 = vmul.f32 0.5, %v2215_v1 }
 0x1f1   : > { %v974_v52 = vmul.f32 0.5, %v2217_v4  ;;  %2218 = vtanh.f32 %v1403_v2 }
 0x1f2   : > { %v1005_v6 = vadd.f32 0.5, %v973_v5  ;;  %2220 = vtanh.f32 %v1404_v3 }
 0x1f3   : > { %v1006_v9 = vadd.f32 0.5, %v974_v52 }
 0x1f4   : > { %1037 = vst [vmem:[%s2734_s13 + $0xf0] sm:$0xff] %v1005_v6  ;;  %v1316_v10 = vpop.f32.mrf.mxu2  ;;  %v1365_v11 = vpop.f32.mrf.mxu3 }
 0x1f5   : > { %1038 = vst [vmem:[%s2734_s13 + $0xf8] sm:$0xff] %v1006_v9  ;;  %v1317_v12 = vadd.f32 %v1316_v10, %v2723_v7  ;;  %v1366_v13 = vadd.f32 %v1365_v11, %v2725_v8 }
 0x1f7   : > { %v2219_v14 = vpop.eup %2218  ;;  %v1405_v15 = vmul.f32 0.5, %v1317_v12  ;;  %v1406_v16 = vmul.f32 0.5, %v1366_v13 }
 0x1f8   : > { %v2221_v17 = vpop.eup %2220  ;;  %v1467_v18 = vmul.f32 0.5, %v2219_v14 }
 0x1f9   : > { %v1468_v19 = vmul.f32 0.5, %v2221_v17  ;;  %2222 = vtanh.f32 %v1405_v15 }
 0x1fa   : > { %v1499_v20 = vadd.f32 0.5, %v1467_v18  ;;  %2224 = vtanh.f32 %v1406_v16 }
 0x1fb   : > { %v1500_v21 = vadd.f32 0.5, %v1468_v19 }
 0x1fc   : > { %1531 = vst [vmem:[%s2734_s13 + $0x100] sm:$0xff] %v1499_v20  ;;  %v1319_v22 = vpop.f32.mrf.mxu2  ;;  %v1368_v23 = vpop.f32.mrf.mxu3 }
 0x1fd   : > { %1532 = vst [vmem:[%s2734_s13 + $0x108] sm:$0xff] %v1500_v21  ;;  %v1320_v24 = vadd.f32 %v1319_v22, %v2723_v7  ;;  %v1369_v25 = vadd.f32 %v1368_v23, %v2725_v8 }
 0x1ff   : > { %v2223_v26 = vpop.eup %2222  ;;  %v1407_v27 = vmul.f32 0.5, %v1320_v24  ;;  %v1408_v28 = vmul.f32 0.5, %v1369_v25 }
 0x200   : > { %v2225_v29 = vpop.eup %2224  ;;  %v1469_v30 = vmul.f32 0.5, %v2223_v26 }
 0x201   : > { %v1470_v31 = vmul.f32 0.5, %v2225_v29  ;;  %2226 = vtanh.f32 %v1407_v27 }
 0x202   : > { %v1501_v32 = vadd.f32 0.5, %v1469_v30  ;;  %2228 = vtanh.f32 %v1408_v28 }
 0x203   : > { %v1502_v33 = vadd.f32 0.5, %v1470_v31 }
 0x204   : > { %1533 = vst [vmem:[%s2734_s13 + $0x110] sm:$0xff] %v1501_v32  ;;  %v1321_v34 = vpop.f32.mrf.mxu2  ;;  %v1370_v35 = vpop.f32.mrf.mxu3 }
 0x205   : > { %1534 = vst [vmem:[%s2734_s13 + $0x118] sm:$0xff] %v1502_v33  ;;  %v1322_v36 = vadd.f32 %v1321_v34, %v2723_v7  ;;  %v1371_v37 = vadd.f32 %v1370_v35, %v2725_v8 }
 0x207   : > { %v2227_v38 = vpop.eup %2226  ;;  %v1409_v39 = vmul.f32 0.5, %v1322_v36  ;;  %v1410_v40 = vmul.f32 0.5, %v1371_v37 }
 0x208   : > { %v2229_v41 = vpop.eup %2228  ;;  %v1471_v42 = vmul.f32 0.5, %v2227_v38 }
 0x209   : > { %v1472_v43 = vmul.f32 0.5, %v2229_v41  ;;  %2230 = vtanh.f32 %v1409_v39 }
 0x20a   : > { %v1503_v44 = vadd.f32 0.5, %v1471_v42  ;;  %2232 = vtanh.f32 %v1410_v40 }
 0x20b   : > { %v1504_v45 = vadd.f32 0.5, %v1472_v43 }
 0x20c   : > { %1535 = vst [vmem:[%s2734_s13 + $0x120] sm:$0xff] %v1503_v44  ;;  %v1324_v46 = vpop.f32.mrf.mxu2  ;;  %v1373_v47 = vpop.f32.mrf.mxu3 }
 0x20d   : > { %1536 = vst [vmem:[%s2734_s13 + $0x128] sm:$0xff] %v1504_v45  ;;  %v1325_v48 = vadd.f32 %v1324_v46, %v2723_v7  ;;  %v1374_v49 = vadd.f32 %v1373_v47, %v2725_v8 }
 0x20f   : > { %v2231_v50 = vpop.eup %2230  ;;  %v1411_v51 = vmul.f32 0.5, %v1325_v48  ;;  %v1412_v53 = vmul.f32 0.5, %v1374_v49 }
 0x210   : > { %v2233_v54 = vpop.eup %2232  ;;  %v1473_v56 = vmul.f32 0.5, %v2231_v50 }
 0x211   : > { %v1474_v58 = vmul.f32 0.5, %v2233_v54  ;;  %2234 = vtanh.f32 %v1411_v51 }
 0x212   : > { %v1505_v55 = vadd.f32 0.5, %v1473_v56  ;;  %2236 = vtanh.f32 %v1412_v53 }
 0x213   : > { %v1506_v57 = vadd.f32 0.5, %v1474_v58 }
 0x214   : > { %1537 = vst [vmem:[%s2734_s13 + $0x130] sm:$0xff] %v1505_v55  ;;  %v1326_v59 = vpop.f32.mrf.mxu2  ;;  %v1375_v60 = vpop.f32.mrf.mxu3 }
 0x215   : > { %1538 = vst [vmem:[%s2734_s13 + $0x138] sm:$0xff] %v1506_v57  ;;  %v1327_v61 = vadd.f32 %v1326_v59, %v2723_v7  ;;  %v1376_v62 = vadd.f32 %v1375_v60, %v2725_v8 }
 0x217   : > { %v2235_v63 = vpop.eup %2234  ;;  %v1413_v0 = vmul.f32 0.5, %v1327_v61  ;;  %v1414_v1 = vmul.f32 0.5, %v1376_v62 }
 0x218   : > { %v2237_v2 = vpop.eup %2236  ;;  %v1475_v3 = vmul.f32 0.5, %v2235_v63 }
 0x219   : > { %v1476_v4 = vmul.f32 0.5, %v2237_v2  ;;  %2238 = vtanh.f32 %v1413_v0 }
 0x21a   : > { %v1507_v5 = vadd.f32 0.5, %v1475_v3  ;;  %2240 = vtanh.f32 %v1414_v1 }
 0x21b   : > { %v1508_v52 = vadd.f32 0.5, %v1476_v4 }
 0x21c   : > { %1539 = vst [vmem:[%s2734_s13 + $0x140] sm:$0xff] %v1507_v5  ;;  %v1329_v6 = vpop.f32.mrf.mxu2  ;;  %v1378_v9 = vpop.f32.mrf.mxu3 }
 0x21d   : > { %1540 = vst [vmem:[%s2734_s13 + $0x148] sm:$0xff] %v1508_v52  ;;  %v1330_v10 = vadd.f32 %v1329_v6, %v2723_v7  ;;  %v1379_v11 = vadd.f32 %v1378_v9, %v2725_v8 }
 0x21f   : > { %v2239_v12 = vpop.eup %2238  ;;  %v1415_v13 = vmul.f32 0.5, %v1330_v10  ;;  %v1416_v14 = vmul.f32 0.5, %v1379_v11 }
 0x220   : > { %v2241_v15 = vpop.eup %2240  ;;  %v1477_v16 = vmul.f32 0.5, %v2239_v12 }
 0x221   : > { %v1478_v17 = vmul.f32 0.5, %v2241_v15  ;;  %2242 = vtanh.f32 %v1415_v13 }
 0x222   : > { %v1509_v18 = vadd.f32 0.5, %v1477_v16  ;;  %2244 = vtanh.f32 %v1416_v14 }
 0x223   : > { %v1510_v19 = vadd.f32 0.5, %v1478_v17 }
 0x224   : > { %1541 = vst [vmem:[%s2734_s13 + $0x150] sm:$0xff] %v1509_v18  ;;  %v1331_v20 = vpop.f32.mrf.mxu2  ;;  %v1380_v21 = vpop.f32.mrf.mxu3 }
 0x225   : > { %1542 = vst [vmem:[%s2734_s13 + $0x158] sm:$0xff] %v1510_v19  ;;  %v1332_v22 = vadd.f32 %v1331_v20, %v2723_v7  ;;  %v1381_v23 = vadd.f32 %v1380_v21, %v2725_v8 }
 0x227   : > { %v2243_v24 = vpop.eup %2242  ;;  %v1417_v25 = vmul.f32 0.5, %v1332_v22  ;;  %v1418_v26 = vmul.f32 0.5, %v1381_v23 }
 0x228   : > { %v2245_v27 = vpop.eup %2244  ;;  %v1479_v28 = vmul.f32 0.5, %v2243_v24 }
 0x229   : > { %v1480_v29 = vmul.f32 0.5, %v2245_v27  ;;  %2246 = vtanh.f32 %v1417_v25 }
 0x22a   : > { %v1511_v30 = vadd.f32 0.5, %v1479_v28  ;;  %2248 = vtanh.f32 %v1418_v26 }
 0x22b   : > { %v1512_v31 = vadd.f32 0.5, %v1480_v29 }
 0x22c   : > { %1543 = vst [vmem:[%s2734_s13 + $0x160] sm:$0xff] %v1511_v30  ;;  %v1334_v32 = vpop.f32.mrf.mxu2  ;;  %v1383_v33 = vpop.f32.mrf.mxu3 }
 0x22d   : > { %1544 = vst [vmem:[%s2734_s13 + $0x168] sm:$0xff] %v1512_v31  ;;  %v1335_v34 = vadd.f32 %v1334_v32, %v2723_v7  ;;  %v1384_v35 = vadd.f32 %v1383_v33, %v2725_v8 }
 0x22f   : > { %v2247_v36 = vpop.eup %2246  ;;  %v1419_v37 = vmul.f32 0.5, %v1335_v34  ;;  %v1420_v38 = vmul.f32 0.5, %v1384_v35 }
 0x230   : > { %v2249_v39 = vpop.eup %2248  ;;  %v1481_v40 = vmul.f32 0.5, %v2247_v36 }
 0x231   : > { %v1482_v41 = vmul.f32 0.5, %v2249_v39  ;;  %2250 = vtanh.f32 %v1419_v37 }
 0x232   : > { %v1513_v42 = vadd.f32 0.5, %v1481_v40  ;;  %2252 = vtanh.f32 %v1420_v38 }
 0x233   : > { %v1514_v43 = vadd.f32 0.5, %v1482_v41 }
 0x234   : > { %1545 = vst [vmem:[%s2734_s13 + $0x170] sm:$0xff] %v1513_v42  ;;  %v1336_v44 = vpop.f32.mrf.mxu2  ;;  %v1385_v45 = vpop.f32.mrf.mxu3 }
 0x235   : > { %1546 = vst [vmem:[%s2734_s13 + $0x178] sm:$0xff] %v1514_v43  ;;  %v1337_v46 = vadd.f32 %v1336_v44, %v2723_v7  ;;  %v1386_v47 = vadd.f32 %v1385_v45, %v2725_v8 }
 0x237   : > { %v2251_v48 = vpop.eup %2250  ;;  %v1421_v49 = vmul.f32 0.5, %v1337_v46  ;;  %v1422_v50 = vmul.f32 0.5, %v1386_v47 }
 0x238   : > { %v2253_v51 = vpop.eup %2252  ;;  %v1483_v53 = vmul.f32 0.5, %v2251_v48 }
 0x239   : > { %v1484_v54 = vmul.f32 0.5, %v2253_v51  ;;  %2254 = vtanh.f32 %v1421_v49 }
 0x23a   : > { %v1515_v56 = vadd.f32 0.5, %v1483_v53  ;;  %2256 = vtanh.f32 %v1422_v50 }
 0x23b   : > { %v1516_v58 = vadd.f32 0.5, %v1484_v54 }
 0x23c   : > { %1547 = vst [vmem:[%s2734_s13 + $0x180] sm:$0xff] %v1515_v56  ;;  %v1339_v55 = vpop.f32.mrf.mxu2  ;;  %v1388_v57 = vpop.f32.mrf.mxu3 }
 0x23d   : > { %1548 = vst [vmem:[%s2734_s13 + $0x188] sm:$0xff] %v1516_v58  ;;  %v1340_v59 = vadd.f32 %v1339_v55, %v2723_v7  ;;  %v1389_v60 = vadd.f32 %v1388_v57, %v2725_v8 }
 0x23f   : > { %v2255_v61 = vpop.eup %2254  ;;  %v1423_v62 = vmul.f32 0.5, %v1340_v59  ;;  %v1424_v63 = vmul.f32 0.5, %v1389_v60 }
 0x240   : > { %v2257_v0 = vpop.eup %2256  ;;  %v1485_v1 = vmul.f32 0.5, %v2255_v61 }
 0x241   : > { %v1486_v2 = vmul.f32 0.5, %v2257_v0  ;;  %2258 = vtanh.f32 %v1423_v62 }
 0x242   : > { %v1517_v3 = vadd.f32 0.5, %v1485_v1  ;;  %2260 = vtanh.f32 %v1424_v63 }
 0x243   : > { %v1518_v4 = vadd.f32 0.5, %v1486_v2 }
 0x244   : > { %1549 = vst [vmem:[%s2734_s13 + $0x190] sm:$0xff] %v1517_v3  ;;  %v1341_v5 = vpop.f32.mrf.mxu2  ;;  %v1390_v52 = vpop.f32.mrf.mxu3 }
 0x245   : > { %1550 = vst [vmem:[%s2734_s13 + $0x198] sm:$0xff] %v1518_v4  ;;  %v1342_v6 = vadd.f32 %v1341_v5, %v2723_v7  ;;  %v1391_v9 = vadd.f32 %v1390_v52, %v2725_v8 }
 0x247   : > { %v2259_v10 = vpop.eup %2258  ;;  %v1425_v11 = vmul.f32 0.5, %v1342_v6  ;;  %v1426_v12 = vmul.f32 0.5, %v1391_v9 }
 0x248   : > { %v2261_v13 = vpop.eup %2260  ;;  %v1487_v14 = vmul.f32 0.5, %v2259_v10 }
 0x249   : > { %v1488_v15 = vmul.f32 0.5, %v2261_v13  ;;  %2262 = vtanh.f32 %v1425_v11 }
 0x24a   : > { %v1519_v16 = vadd.f32 0.5, %v1487_v14  ;;  %2264 = vtanh.f32 %v1426_v12 }
 0x24b   : > { %v1520_v17 = vadd.f32 0.5, %v1488_v15 }
 0x24c   : > { %1551 = vst [vmem:[%s2734_s13 + $0x1a0] sm:$0xff] %v1519_v16  ;;  %v1344_v18 = vpop.f32.mrf.mxu2  ;;  %v1393_v19 = vpop.f32.mrf.mxu3 }
 0x24d   : > { %1552 = vst [vmem:[%s2734_s13 + $0x1a8] sm:$0xff] %v1520_v17  ;;  %v1345_v20 = vadd.f32 %v1344_v18, %v2723_v7  ;;  %v1394_v21 = vadd.f32 %v1393_v19, %v2725_v8 }
 0x24f   : > { %v2263_v22 = vpop.eup %2262  ;;  %v1427_v23 = vmul.f32 0.5, %v1345_v20  ;;  %v1428_v24 = vmul.f32 0.5, %v1394_v21 }
 0x250   : > { %v2265_v25 = vpop.eup %2264  ;;  %v1489_v26 = vmul.f32 0.5, %v2263_v22 }
 0x251   : > { %v1490_v27 = vmul.f32 0.5, %v2265_v25  ;;  %2266 = vtanh.f32 %v1427_v23 }
 0x252   : > { %v1521_v28 = vadd.f32 0.5, %v1489_v26  ;;  %2268 = vtanh.f32 %v1428_v24 }
 0x253   : > { %v1522_v29 = vadd.f32 0.5, %v1490_v27 }
 0x254   : > { %1553 = vst [vmem:[%s2734_s13 + $0x1b0] sm:$0xff] %v1521_v28  ;;  %v1346_v30 = vpop.f32.mrf.mxu2  ;;  %v1395_v31 = vpop.f32.mrf.mxu3 }
 0x255   : > { %1554 = vst [vmem:[%s2734_s13 + $0x1b8] sm:$0xff] %v1522_v29  ;;  %v1347_v32 = vadd.f32 %v1346_v30, %v2723_v7  ;;  %v1396_v33 = vadd.f32 %v1395_v31, %v2725_v8 }
 0x257   : > { %v2267_v34 = vpop.eup %2266  ;;  %v1429_v35 = vmul.f32 0.5, %v1347_v32  ;;  %v1430_v36 = vmul.f32 0.5, %v1396_v33 }
 0x258   : > { %v2269_v37 = vpop.eup %2268  ;;  %v1491_v38 = vmul.f32 0.5, %v2267_v34 }
 0x259   : > { %v1492_v39 = vmul.f32 0.5, %v2269_v37  ;;  %2270 = vtanh.f32 %v1429_v35 }
 0x25a   : > { %v1523_v40 = vadd.f32 0.5, %v1491_v38  ;;  %2272 = vtanh.f32 %v1430_v36 }
 0x25b   : > { %v1524_v41 = vadd.f32 0.5, %v1492_v39 }
 0x25c   : > { %1555 = vst [vmem:[%s2734_s13 + $0x1c0] sm:$0xff] %v1523_v40  ;;  %v1349_v42 = vpop.f32.mrf.mxu2  ;;  %v1398_v43 = vpop.f32.mrf.mxu3 }
 0x25d   : > { %1556 = vst [vmem:[%s2734_s13 + $0x1c8] sm:$0xff] %v1524_v41  ;;  %v1350_v44 = vadd.f32 %v1349_v42, %v2723_v7  ;;  %v1399_v45 = vadd.f32 %v1398_v43, %v2725_v8 }
 0x25f   : > { %v2271_v46 = vpop.eup %2270  ;;  %v1431_v47 = vmul.f32 0.5, %v1350_v44  ;;  %v1432_v48 = vmul.f32 0.5, %v1399_v45 }
 0x260   : > { %v2273_v49 = vpop.eup %2272  ;;  %v1493_v50 = vmul.f32 0.5, %v2271_v46 }
 0x261   : > { %v1494_v51 = vmul.f32 0.5, %v2273_v49  ;;  %2274 = vtanh.f32 %v1431_v47 }
 0x262   : > { %v1525_v53 = vadd.f32 0.5, %v1493_v50  ;;  %2276 = vtanh.f32 %v1432_v48 }
 0x263   : > { %v1526_v54 = vadd.f32 0.5, %v1494_v51 }
 0x264   : > { %1557 = vst [vmem:[%s2734_s13 + $0x1d0] sm:$0xff] %v1525_v53  ;;  %v1351_v56 = vpop.f32.mrf.mxu2  ;;  %v1400_v58 = vpop.f32.mrf.mxu3 }
 0x265   : > { %1558 = vst [vmem:[%s2734_s13 + $0x1d8] sm:$0xff] %v1526_v54  ;;  %v1352_v55 = vadd.f32 %v1351_v56, %v2723_v7  ;;  %v1401_v57 = vadd.f32 %v1400_v58, %v2725_v8 }
 0x267   : > { %v2275_v59 = vpop.eup %2274  ;;  %v1433_v60 = vmul.f32 0.5, %v1352_v55  ;;  %v1434_v61 = vmul.f32 0.5, %v1401_v57 }
 0x268   : > { %v2277_v62 = vpop.eup %2276  ;;  %v1495_v63 = vmul.f32 0.5, %v2275_v59 }
 0x269   : > { %v1496_v0 = vmul.f32 0.5, %v2277_v62  ;;  %2278 = vtanh.f32 %v1433_v60 }
 0x26a   : > { %v1527_v1 = vadd.f32 0.5, %v1495_v63  ;;  %2280 = vtanh.f32 %v1434_v61 }
 0x26b   : > { %v1528_v2 = vadd.f32 0.5, %v1496_v0 }
 0x26c   : > { %1559 = vst [vmem:[%s2734_s13 + $0x1e0] sm:$0xff] %v1527_v1 }
 0x26d   : > { %1560 = vst [vmem:[%s2734_s13 + $0x1e8] sm:$0xff] %v1528_v2 }
 0x26f   : > { %v2279_v7 = vpop.eup %2278 }
 0x270   : > { %v2281_v8 = vpop.eup %2280  ;;  %v1497_v3 = vmul.f32 0.5, %v2279_v7 }
 0x271   : > { %v1498_v4 = vmul.f32 0.5, %v2281_v8 }
 0x272   : > { %v1529_v5 = vadd.f32 0.5, %v1497_v3 }
 0x273   : > { %v1530_v52 = vadd.f32 0.5, %v1498_v4 }
 0x274   : > { %1561 = vst [vmem:[%s2734_s13 + $0x1f0] sm:$0xff] %v1529_v5 }
 0x275   : > { %1562 = vst [vmem:[%s2734_s13 + $0x1f8] sm:$0xff] %v1530_v52 }
 0x276   : > { %2400 = shalt.err (!%p2397_p10)
}
 0x277   : > { %s2451_s10 = smov 256   ;;  %s2452_s13 = smov 16  }
 0x278   : > { %2026 = dma.vmem_to_hbm [thread:$0]  (%p2555_p5), %s1578_s23, 8192, %s1580_s14, %s1564_s22, %s2451_s10, %s2451_s10, %s2452_s13  }
 0x279 PF: > { %s1594_s30 = sand.u32 1, %s2431_s18   ;;  %p2917_p12 = scmp.ge.s32.totalorder %s2443_s21, 2 }
 0x27a   : > { %s1595_s7 = scalar_lea.sflag [#allocation4], %s1594_s30 }
 0x27b   : > { %p2040_p13 = pnand %p2917_p12, %p2518_p6 }
 0x27d   : > { %p2041_p0 = pneg %p2040_p13 }
 0x27f   : > { %2426 = dma.done.wait (%p2041_p0), %s1595_s7, 8192  }
 0x280   : > { %2428 = vsyncadd (%p2041_p0), %s1595_s7, 4294959104  ;;  %p19_p3 = scmp.ge.s32.totalorder %s2542_s16, 4   ;;  %s2918_s18 = smov %s2435_s19 }
 0x281   : > { %s2919_s19 = smov %s2439_s20  ;;  %s2920_s20 = smov %s2551_s26 }
 0x282   : > { %s2921_s21 = smov %s2542_s16  ;;  %21 = sbr.rel (!%p19_p3) target bundleno = 6 (0x6), region = 93 }
 0x287   :  { %1601 = vsyncpa [#allocation3], 1 }
 0x288   :  { %1603 = vsyncpa [#allocation3 + $0x1], 1 }
 0x289   :  { %1604 = vsyncpa [#allocation6], 1 }
 0x28a   :  { %1605 = vsyncpa [#allocation4], 1 }
 0x28b   :  { %1607 = vsyncpa [#allocation4 + $0x1], 1 }

</bundles_post_ra>
